<compile_context>
chip_gen: v7x
topology: tpu7x:2x2x1
jax: 0.10.0
libtpu: 0.0.40
codegen_flags: <defaults>
</compile_context>

<pallas_src>
import functools

import jax
import jax.numpy as jnp
from jax.experimental import pallas as pl
from jax.experimental.pallas import tpu as pltpu

LANE = 128
SUBLANE = 8
VMEM_LIMIT = 32 * 1024 * 1024  # safe for v7x's smaller VMEM as well as v5e/v6e


def _round_up(x, m):
    return (x + m - 1) // m * m


def _pick_tm(m, cap=512, min_grid=2):
    """Largest multiple-of-8 tile that divides m exactly (no padded rows) while
    giving at least `min_grid` grid steps (DMA/compute overlap, v7x megacore).
    Falls back to an even split rounded up to 8 (tail rows get zero-padded)."""
    best = None
    for t in range(SUBLANE, cap + 1, SUBLANE):
        if m % t == 0 and m // t >= min_grid:
            best = t
    if best is None:
        best = min(cap, _round_up(pl.cdiv(m, min_grid), SUBLANE))
    return best


# ----------------------------------------------------------------------------
# Pallas kernel 1: M-tiled  out = (X @ W) + bias  [+ ReLU]   (BN pre-folded)
#   X, W in bf16 (native MXU path), accumulate + epilogue in f32, out bf16.
# ----------------------------------------------------------------------------
def _gemm_bias_act_kernel(x_ref, w_ref, b_ref, o_ref, *, apply_relu):
    acc = jnp.dot(x_ref[...], w_ref[...], preferred_element_type=jnp.float32)
    out = acc + b_ref[...]
    if apply_relu:
        out = jnp.maximum(out, 0.0)
    o_ref[...] = out.astype(o_ref.dtype)


def gemm_bias_act(x, w, b, *, apply_relu, tm, out_dtype=jnp.bfloat16):
    """x: (M, K) bf16 with K % 128 == 0, w: (K, N) bf16 with N % 128 == 0,
    b: (1, N) f32.  Returns (M, N) = relu?(x @ w + b), tiled over M."""
    M, K = x.shape
    Kw, N = w.shape
    assert K == Kw and K % LANE == 0 and N % LANE == 0, (x.shape, w.shape)

    TM = min(tm, _round_up(M, SUBLANE))
    Mp = _round_up(M, TM)
    if Mp != M:
        # Padded tail rows come out as relu(bias); sliced off below.
        x = jnp.pad(x, ((0, Mp - M), (0, 0)))

    kernel = functools.partial(_gemm_bias_act_kernel, apply_relu=apply_relu)
    out = pl.pallas_call(
        kernel,
        out_shape=jax.ShapeDtypeStruct((Mp, N), out_dtype),
        grid_spec=pltpu.PrefetchScalarGridSpec(
            num_scalar_prefetch=0,
            grid=(Mp // TM,),
            in_specs=[
                pl.BlockSpec((TM, K), lambda i: (i, 0)),   # X tile (pipelined)
                pl.BlockSpec((K, N), lambda i: (0, 0)),    # W resident (constant idx)
                pl.BlockSpec((1, N), lambda i: (0, 0)),    # bias resident
            ],
            out_specs=pl.BlockSpec((TM, N), lambda i: (i, 0)),
        ),
        compiler_params=pltpu.CompilerParams(
            dimension_semantics=("parallel",),
            vmem_limit_bytes=VMEM_LIMIT,
        ),
        cost_estimate=pl.CostEstimate(
            flops=2 * Mp * K * N,
            transcendentals=0,
            bytes_accessed=int(x.dtype.itemsize * Mp * K + w.dtype.itemsize * K * N
                               + 4 * N + jnp.dtype(out_dtype).itemsize * Mp * N),
        ),
    )(x, w, b)
    return out[:M] if Mp != M else out


# ----------------------------------------------------------------------------
# Pallas kernel 2: fused fc head  out = (x @ W1 + b1) @ W2 + b2
# (F.dropout between fc1 and fc2 is identity in eval mode; hidden stays in VMEM.)
# ----------------------------------------------------------------------------
def _fc_head_kernel(x_ref, w1_ref, b1_ref, w2_ref, b2_ref, o_ref):
    h = jnp.dot(x_ref[...], w1_ref[...], preferred_element_type=jnp.float32)
    h = h + b1_ref[...]
    o = jnp.dot(h.astype(w2_ref.dtype), w2_ref[...],
                preferred_element_type=jnp.float32)
    o_ref[...] = (o + b2_ref[...]).astype(o_ref.dtype)


def fc_head(x, w1, b1, w2, b2):
    M, K = x.shape
    _, H = w1.shape
    _, N = w2.shape
    return pl.pallas_call(
        _fc_head_kernel,
        out_shape=jax.ShapeDtypeStruct((M, N), jnp.float32),
        in_specs=[pl.BlockSpec(memory_space=pltpu.MemorySpace.VMEM)] * 5,
        out_specs=pl.BlockSpec(memory_space=pltpu.MemorySpace.VMEM),
        compiler_params=pltpu.CompilerParams(vmem_limit_bytes=VMEM_LIMIT),
        cost_estimate=pl.CostEstimate(
            flops=2 * M * K * H + 2 * M * H * N,
            transcendentals=0,
            bytes_accessed=int(x.dtype.itemsize * M * K + w1.dtype.itemsize * K * H
                               + w2.dtype.itemsize * H * N + 4 * (M * N + H + N)),
        ),
    )(x, w1, b1, w2, b2)


# ----------------------------------------------------------------------------
# Plain-JAX glue: channels-last im2col for 3-D convolution (bf16, K pre-padded)
# ----------------------------------------------------------------------------
def conv3d_output_size(sz, pad, k, s):
    return tuple((sz[i] + 2 * pad[i] - (k[i] - 1) - 1) // s[i] + 1 for i in range(3))


# TODO(synk): fold this patch gather into the Pallas pipeline (implicit GEMM)
# instead of materializing the im2col buffer in HBM — see header TODO.
def im2col_3d_ndhwc(x, k, s, p, kp, dtype=jnp.bfloat16):
    """x: (B, D, H, W, C) -> cols (B*Do*Ho*Wo, kp) in `dtype`, zero-padded from
    kd*kh*kw*C to kp columns; K order (dz, dy, dx, c)."""
    B, D, H, W, C = x.shape
    kd, kh, kw = k
    sd, sh, sw = s
    pd_, ph, pw = p
    xp = jnp.pad(x.astype(dtype), ((0, 0), (pd_, pd_), (ph, ph), (pw, pw), (0, 0)))
    Do, Ho, Wo = conv3d_output_size((D, H, W), p, k, s)
    patches = []
    for dz in range(kd):
        for dy in range(kh):
            for dx in range(kw):
                patches.append(
                    xp[:,
                       dz:dz + sd * Do:sd,
                       dy:dy + sh * Ho:sh,
                       dx:dx + sw * Wo:sw,
                       :])
    cols = jnp.stack(patches, axis=4)            # (B, Do, Ho, Wo, K3, C)
    cols = cols.reshape(B * Do * Ho * Wo, kd * kh * kw * C)
    K = cols.shape[1]
    if K != kp:                                   # pad K inside the same fusion
        cols = jnp.pad(cols, ((0, 0), (0, kp - K)))
    return cols, (Do, Ho, Wo)


def fold_bn(conv_bias, gamma, beta, mean, var, eps=1e-5):
    """Fold conv bias + eval-mode BatchNorm into per-channel scale / shift."""
    inv_std = 1.0 / jnp.sqrt(var + eps)
    scale = gamma * inv_std
    shift = beta + (conv_bias - mean) * scale
    return scale.reshape(1, -1), shift.reshape(1, -1)


def prep_conv_gemm(conv_w, conv_b, gamma, beta, mean, var, dtype=jnp.bfloat16):
    """Fold BN into the conv weights, lay them out lane-dense, cast to bf16.
    conv_w: (Cout, Cin, kd, kh, kw) -> w_pad: (Kp, Np) bf16, b_pad: (1, Np) f32."""
    cout = conv_w.shape[0]
    scale, shift = fold_bn(conv_b, gamma, beta, mean, var)
    # K order (dz, dy, dx, cin) to match the channels-last im2col above.
    w_mat = jnp.transpose(conv_w, (2, 3, 4, 1, 0)).reshape(-1, cout)
    w_mat = w_mat * scale                          # fold BN scale into weights
    K = w_mat.shape[0]
    Kp, Np = _round_up(K, LANE), _round_up(cout, LANE)
    w_pad = jnp.zeros((Kp, Np), jnp.float32).at[:K, :cout].set(w_mat).astype(dtype)
    b_pad = jnp.zeros((1, Np), jnp.float32).at[:, :cout].set(shift)
    return w_pad, b_pad, Kp


# ----------------------------------------------------------------------------
# CNN3D parameters (PyTorch layouts + pre-folded / padded bf16 GEMM operands)
# ----------------------------------------------------------------------------
class CNN3DParams:
    def __init__(self, key, t_dim=16, img_x=32, img_y=32, fc_hidden1=32, num_classes=3):
        self.t_dim, self.img_x, self.img_y = t_dim, img_x, img_y
        self.ch1, self.ch2 = 16, 32
        self.k1, self.k2 = (5, 5, 5), (3, 3, 3)
        self.s1, self.s2 = (2, 2, 2), (2, 2, 2)
        self.pd1, self.pd2 = (1, 0, 0), (1, 0, 0)
        self.conv1_outshape = conv3d_output_size((t_dim, img_x, img_y), self.pd1, self.k1, self.s1)
        self.conv2_outshape = conv3d_output_size(self.conv1_outshape, self.pd2, self.k2, self.s2)
        self.fc_hidden1 = fc_hidden1
        self.num_classes = num_classes
        d2, h2, w2 = self.conv2_outshape
        flat = self.ch2 * d2 * h2 * w2

        ks = jax.random.split(key, 16)
        n = lambda k, shp, s=0.05: jax.random.normal(k, shp, jnp.float32) * s
        # ---- raw parameters (PyTorch layouts) ----
        conv1_w = n(ks[0], (self.ch1, 1) + self.k1)       # (Cout, Cin, kd, kh, kw)
        conv1_b = n(ks[1], (self.ch1,))
        bn1_gamma = 1.0 + n(ks[2], (self.ch1,))
        bn1_beta = n(ks[3], (self.ch1,))
        bn1_mean = n(ks[4], (self.ch1,))
        bn1_var = 1.0 + jnp.abs(n(ks[5], (self.ch1,)))
        conv2_w = n(ks[6], (self.ch2, self.ch1) + self.k2)
        conv2_b = n(ks[7], (self.ch2,))
        bn2_gamma = 1.0 + n(ks[8], (self.ch2,))
        bn2_beta = n(ks[9], (self.ch2,))
        bn2_mean = n(ks[10], (self.ch2,))
        bn2_var = 1.0 + jnp.abs(n(ks[11], (self.ch2,)))
        fc1_w = n(ks[12], (fc_hidden1, flat))             # PyTorch Linear: (out, in)
        fc1_b = n(ks[13], (fc_hidden1,))
        fc2_w = n(ks[14], (num_classes, fc_hidden1))
        fc2_b = n(ks[15], (num_classes,))

        # ---- pre-folded / lane-padded bf16 GEMM operands (eval-mode BN folded) ----
        self.conv1_w_pad, self.conv1_b_pad, self.conv1_kp = prep_conv_gemm(
            conv1_w, conv1_b, bn1_gamma, bn1_beta, bn1_mean, bn1_var)
        self.conv2_w_pad, self.conv2_b_pad, self.conv2_kp = prep_conv_gemm(
            conv2_w, conv2_b, bn2_gamma, bn2_beta, bn2_mean, bn2_var)

        # fc1 columns are permuted from PyTorch's NCDHW flatten order (c, d, h, w)
        # to the NDHWC order (d, h, w, c) produced by the channels-last conv
        # stack, so logits match the PyTorch reference.
        fc1_w_perm = fc1_w.reshape(fc_hidden1, self.ch2, d2, h2, w2)
        fc1_w_perm = jnp.transpose(fc1_w_perm, (0, 2, 3, 4, 1)).reshape(fc_hidden1, flat)
        self.flat_dim = flat
        self.fc1_kp = _round_up(flat, LANE)
        hp = _round_up(fc_hidden1, LANE)
        np_ = _round_up(num_classes, LANE)
        self.fc1_w_pad = (jnp.zeros((self.fc1_kp, hp), jnp.float32)
                          .at[:flat, :fc_hidden1].set(fc1_w_perm.T)).astype(jnp.bfloat16)
        self.fc1_b_pad = jnp.zeros((1, hp), jnp.float32).at[:, :fc_hidden1].set(fc1_b)
        self.fc2_w_pad = (jnp.zeros((hp, np_), jnp.float32)
                          .at[:fc_hidden1, :num_classes].set(fc2_w.T)).astype(jnp.bfloat16)
        self.fc2_b_pad = jnp.zeros((1, np_), jnp.float32).at[:, :num_classes].set(fc2_b)


# ----------------------------------------------------------------------------
# CNN3D forward (eval mode)
# ----------------------------------------------------------------------------
def cnn3d_forward(params, x_3d):
    """x_3d: (B, 1, t_dim, img_x, img_y) float32 -> logits (B, num_classes) f32."""
    p = params
    B = x_3d.shape[0]
    # NCDHW -> NDHWC once; stay channels-last through the whole conv stack.
    x = jnp.transpose(x_3d, (0, 2, 3, 4, 1))

    # ---- conv1 + bn1 + relu (Dropout3d = identity in eval) ----
    cols1, (d1, h1, w1) = im2col_3d_ndhwc(x, p.k1, p.s1, p.pd1, p.conv1_kp)
    tm1 = _pick_tm(cols1.shape[0])                 # B=2 -> 392, grid = 7, Mp == M
    y1 = gemm_bias_act(cols1, p.conv1_w_pad, p.conv1_b_pad, apply_relu=True, tm=tm1)
    y1 = y1[:, :p.ch1].reshape(B, d1, h1, w1, p.ch1)   # drop padded channels

    # ---- conv2 + bn2 + relu (Dropout3d = identity in eval) ----
    cols2, (d2, h2, w2) = im2col_3d_ndhwc(y1, p.k2, p.s2, p.pd2, p.conv2_kp)
    tm2 = _pick_tm(cols2.shape[0])                 # B=2 -> 144, grid = 2 (v7x megacore)
    y2 = gemm_bias_act(cols2, p.conv2_w_pad, p.conv2_b_pad, apply_relu=True, tm=tm2)

    # ---- flatten (NDHWC order; fc1 weights were column-permuted to match) ----
    flat = y2[:, :p.ch2].reshape(B, -1)            # bf16, (B, flat_dim)
    if flat.shape[1] != p.fc1_kp:
        flat = jnp.pad(flat, ((0, 0), (0, p.fc1_kp - flat.shape[1])))

    # ---- fc1 + (F.dropout = identity in eval) + fc2, fused in one kernel ----
    out = fc_head(flat, p.fc1_w_pad, p.fc1_b_pad, p.fc2_w_pad, p.fc2_b_pad)
    return out[:, :p.num_classes]


if __name__ == "__main__":
    key = jax.random.PRNGKey(0)
    k_param, k_input = jax.random.split(key)

    # Small shapes consistent with the module: B=2, 1 input channel,
    # t_dim=16, img_x=img_y=32, fc_hidden1=32, num_classes=3.
    params = CNN3DParams(k_param, t_dim=16, img_x=32, img_y=32,
                         fc_hidden1=32, num_classes=3)
    x = jax.random.normal(k_input, (2, 1, 16, 32, 32), jnp.float32)

    fwd = jax.jit(lambda xx: cnn3d_forward(params, xx))
    logits = jax.block_until_ready(fwd(x))

    assert logits.shape == (2, 3), logits.shape
    assert bool(jnp.all(jnp.isfinite(logits)))
    print("KERNEL_OK")
</pallas_src>

<mosaic_0001>
module attributes {stable_mosaic.version = 11 : i64} {
  func.func @_gemm_bias_act_kernel(%arg0: i32, %arg1: memref<392x128xbf16, #tpu.memory_space<vmem>>, %arg2: memref<128x128xbf16, #tpu.memory_space<vmem>>, %arg3: memref<1x128xf32, #tpu.memory_space<vmem>>, %arg4: memref<392x128xbf16, #tpu.memory_space<vmem>>) attributes {dimension_semantics = [#tpu.dimension_semantics<parallel>], iteration_bounds = array<i64: 7>, scalar_prefetch = 0 : i64, scratch_operands = 0 : i64, tpu.core_type = #tpu.core_type<tc>, window_params = [{transform_indices = @transform_0, window_bounds = array<i64: 392, 128>}, {pipeline_mode = #tpu.pipeline_mode<synchronous>, transform_indices = @transform_1, window_bounds = array<i64: 128, 128>}, {pipeline_mode = #tpu.pipeline_mode<synchronous>, transform_indices = @transform_2, window_bounds = array<i64: 1, 128>}, {transform_indices = @transform_3, window_bounds = array<i64: 392, 128>}]} {
    %c0 = arith.constant 0 : index
    %c0_0 = arith.constant 0 : index
    %0 = vector.load %arg1[%c0, %c0_0] : memref<392x128xbf16, #tpu.memory_space<vmem>>, vector<392x128xbf16>
    %c0_1 = arith.constant 0 : index
    %c0_2 = arith.constant 0 : index
    %1 = vector.load %arg2[%c0_1, %c0_2] : memref<128x128xbf16, #tpu.memory_space<vmem>>, vector<128x128xbf16>
    %cst = arith.constant dense<0.000000e+00> : vector<392x128xf32>
    %2 = tpu.matmul %0, %1, %cst {dimension_numbers = #tpu.dot_dimension_numbers<[1], [0], [0], [1], [0, 0, 1, 1], [], []>} : vector<392x128xbf16>, vector<128x128xbf16>, vector<392x128xf32> -> vector<392x128xf32>
    %c0_3 = arith.constant 0 : index
    %c0_4 = arith.constant 0 : index
    %3 = vector.load %arg3[%c0_3, %c0_4] : memref<1x128xf32, #tpu.memory_space<vmem>>, vector<1x128xf32>
    %4 = vector.broadcast %3 : vector<1x128xf32> to vector<392x128xf32>
    %5 = arith.addf %2, %4 : vector<392x128xf32>
    %cst_5 = arith.constant 0.000000e+00 : f32
    %6 = vector.broadcast %cst_5 : f32 to vector<392x128xf32>
    %7 = arith.maximumf %5, %6 : vector<392x128xf32>
    %8 = arith.truncf %7 : vector<392x128xf32> to vector<392x128xbf16>
    %c0_6 = arith.constant 0 : index
    %c0_7 = arith.constant 0 : index
    %9 = vector.load %arg4[%c0_6, %c0_7] : memref<392x128xbf16, #tpu.memory_space<vmem>>, vector<392x128xbf16>
    tpu.vector_store %arg4[%c0_6, %c0_7], %8 {strides = array<i32>} : memref<392x128xbf16, #tpu.memory_space<vmem>>, vector<392x128xbf16>,
    return
  }
  func.func @transform_0(%arg0: i32) -> (i32, i32) {
    %c0_i32 = arith.constant 0 : i32
    %c0_i32_0 = arith.constant 0 : i32
    return %arg0, %c0_i32 : i32, i32
  }
  func.func @transform_1(%arg0: i32) -> (i32, i32) {
    %c0_i32 = arith.constant 0 : i32
    %c0_i32_0 = arith.constant 0 : i32
    %c0_i32_1 = arith.constant 0 : i32
    return %c0_i32, %c0_i32_0 : i32, i32
  }
  func.func @transform_2(%arg0: i32) -> (i32, i32) {
    %c0_i32 = arith.constant 0 : i32
    %c0_i32_0 = arith.constant 0 : i32
    %c0_i32_1 = arith.constant 0 : i32
    return %c0_i32, %c0_i32_0 : i32, i32
  }
  func.func @transform_3(%arg0: i32) -> (i32, i32) {
    %c0_i32 = arith.constant 0 : i32
    %c0_i32_0 = arith.constant 0 : i32
    return %arg0, %c0_i32 : i32, i32
  }
}

module attributes {stable_mosaic.version = 11 : i64} {
  func.func @_gemm_bias_act_kernel(%arg0: i32, %arg1: memref<144x512xbf16, #tpu.memory_space<vmem>>, %arg2: memref<512x128xbf16, #tpu.memory_space<vmem>>, %arg3: memref<1x128xf32, #tpu.memory_space<vmem>>, %arg4: memref<144x128xbf16, #tpu.memory_space<vmem>>) attributes {dimension_semantics = [#tpu.dimension_semantics<parallel>], iteration_bounds = array<i64: 2>, scalar_prefetch = 0 : i64, scratch_operands = 0 : i64, tpu.core_type = #tpu.core_type<tc>, window_params = [{transform_indices = @transform_0, window_bounds = array<i64: 144, 512>}, {pipeline_mode = #tpu.pipeline_mode<synchronous>, transform_indices = @transform_1, window_bounds = array<i64: 512, 128>}, {pipeline_mode = #tpu.pipeline_mode<synchronous>, transform_indices = @transform_2, window_bounds = array<i64: 1, 128>}, {transform_indices = @transform_3, window_bounds = array<i64: 144, 128>}]} {
    %c0 = arith.constant 0 : index
    %c0_0 = arith.constant 0 : index
    %0 = vector.load %arg1[%c0, %c0_0] : memref<144x512xbf16, #tpu.memory_space<vmem>>, vector<144x512xbf16>
    %c0_1 = arith.constant 0 : index
    %c0_2 = arith.constant 0 : index
    %1 = vector.load %arg2[%c0_1, %c0_2] : memref<512x128xbf16, #tpu.memory_space<vmem>>, vector<512x128xbf16>
    %cst = arith.constant dense<0.000000e+00> : vector<144x128xf32>
    %2 = tpu.matmul %0, %1, %cst {dimension_numbers = #tpu.dot_dimension_numbers<[1], [0], [0], [1], [0, 0, 1, 1], [], []>} : vector<144x512xbf16>, vector<512x128xbf16>, vector<144x128xf32> -> vector<144x128xf32>
    %c0_3 = arith.constant 0 : index
    %c0_4 = arith.constant 0 : index
    %3 = vector.load %arg3[%c0_3, %c0_4] : memref<1x128xf32, #tpu.memory_space<vmem>>, vector<1x128xf32>
    %4 = vector.broadcast %3 : vector<1x128xf32> to vector<144x128xf32>
    %5 = arith.addf %2, %4 : vector<144x128xf32>
    %cst_5 = arith.constant 0.000000e+00 : f32
    %6 = vector.broadcast %cst_5 : f32 to vector<144x128xf32>
    %7 = arith.maximumf %5, %6 : vector<144x128xf32>
    %8 = arith.truncf %7 : vector<144x128xf32> to vector<144x128xbf16>
    %c0_6 = arith.constant 0 : index
    %c0_7 = arith.constant 0 : index
    %9 = vector.load %arg4[%c0_6, %c0_7] : memref<144x128xbf16, #tpu.memory_space<vmem>>, vector<144x128xbf16>
    tpu.vector_store %arg4[%c0_6, %c0_7], %8 {strides = array<i32>} : memref<144x128xbf16, #tpu.memory_space<vmem>>, vector<144x128xbf16>,
    return
  }
  func.func @transform_0(%arg0: i32) -> (i32, i32) {
    %c0_i32 = arith.constant 0 : i32
    %c0_i32_0 = arith.constant 0 : i32
    return %arg0, %c0_i32 : i32, i32
  }
  func.func @transform_1(%arg0: i32) -> (i32, i32) {
    %c0_i32 = arith.constant 0 : i32
    %c0_i32_0 = arith.constant 0 : i32
    %c0_i32_1 = arith.constant 0 : i32
    return %c0_i32, %c0_i32_0 : i32, i32
  }
  func.func @transform_2(%arg0: i32) -> (i32, i32) {
    %c0_i32 = arith.constant 0 : i32
    %c0_i32_0 = arith.constant 0 : i32
    %c0_i32_1 = arith.constant 0 : i32
    return %c0_i32, %c0_i32_0 : i32, i32
  }
  func.func @transform_3(%arg0: i32) -> (i32, i32) {
    %c0_i32 = arith.constant 0 : i32
    %c0_i32_0 = arith.constant 0 : i32
    return %arg0, %c0_i32 : i32, i32
  }
}

module attributes {stable_mosaic.version = 11 : i64} {
  func.func @_fc_head_kernel(%arg0: memref<2x4608xbf16, #tpu.memory_space<vmem>>, %arg1: memref<4608x128xbf16, #tpu.memory_space<vmem>>, %arg2: memref<1x128xf32, #tpu.memory_space<vmem>>, %arg3: memref<128x128xbf16, #tpu.memory_space<vmem>>, %arg4: memref<1x128xf32, #tpu.memory_space<vmem>>, %arg5: memref<2x128xf32, #tpu.memory_space<vmem>>) attributes {dimension_semantics = [], scalar_prefetch = 0 : i64, scratch_operands = 0 : i64, tpu.core_type = #tpu.core_type<tc>} {
    %c0 = arith.constant 0 : index
    %c0_0 = arith.constant 0 : index
    %0 = vector.load %arg0[%c0, %c0_0] : memref<2x4608xbf16, #tpu.memory_space<vmem>>, vector<2x4608xbf16>
    %c0_1 = arith.constant 0 : index
    %c0_2 = arith.constant 0 : index
    %1 = vector.load %arg1[%c0_1, %c0_2] : memref<4608x128xbf16, #tpu.memory_space<vmem>>, vector<4608x128xbf16>
    %cst = arith.constant dense<0.000000e+00> : vector<2x128xf32>
    %2 = tpu.matmul %0, %1, %cst {dimension_numbers = #tpu.dot_dimension_numbers<[1], [0], [0], [1], [0, 0, 1, 1], [], []>} : vector<2x4608xbf16>, vector<4608x128xbf16>, vector<2x128xf32> -> vector<2x128xf32>
    %c0_3 = arith.constant 0 : index
    %c0_4 = arith.constant 0 : index
    %3 = vector.load %arg2[%c0_3, %c0_4] : memref<1x128xf32, #tpu.memory_space<vmem>>, vector<1x128xf32>
    %4 = vector.broadcast %3 : vector<1x128xf32> to vector<2x128xf32>
    %5 = arith.addf %2, %4 : vector<2x128xf32>
    %6 = arith.truncf %5 : vector<2x128xf32> to vector<2x128xbf16>
    %c0_5 = arith.constant 0 : index
    %c0_6 = arith.constant 0 : index
    %7 = vector.load %arg3[%c0_5, %c0_6] : memref<128x128xbf16, #tpu.memory_space<vmem>>, vector<128x128xbf16>
    %cst_7 = arith.constant dense<0.000000e+00> : vector<2x128xf32>
    %8 = tpu.matmul %6, %7, %cst_7 {dimension_numbers = #tpu.dot_dimension_numbers<[1], [0], [0], [1], [0, 0, 1, 1], [], []>} : vector<2x128xbf16>, vector<128x128xbf16>, vector<2x128xf32> -> vector<2x128xf32>
    %c0_8 = arith.constant 0 : index
    %c0_9 = arith.constant 0 : index
    %9 = vector.load %arg4[%c0_8, %c0_9] : memref<1x128xf32, #tpu.memory_space<vmem>>, vector<1x128xf32>
    %10 = vector.broadcast %9 : vector<1x128xf32> to vector<2x128xf32>
    %11 = arith.addf %8, %10 : vector<2x128xf32>
    %c0_10 = arith.constant 0 : index
    %c0_11 = arith.constant 0 : index
    %12 = vector.load %arg5[%c0_10, %c0_11] : memref<2x128xf32, #tpu.memory_space<vmem>>, vector<2x128xf32>
    tpu.vector_store %arg5[%c0_10, %c0_11], %11 {strides = array<i32>} : memref<2x128xf32, #tpu.memory_space<vmem>>, vector<2x128xf32>,
    return
  }
}

</mosaic_0001>

<bundles_post_ra>
// kernel: _lambda_.3
= control target key start
LH: loop header
LB: loop body
LE: loop exit
PB: predicated region body
PF: predicated region fallthrough
CT: control target
= control target key end

     0   :  { %s1548_s12 = smov 0   ;;  %s1770_s0 = inlined_call_operand.vmem [shape: bf16[2744,128], index: 0, kind: input, shape index: {}]   ;;  %s1771_s1 = inlined_call_operand.vmem [shape: bf16[128,128], index: 1, kind: input, shape index: {}]   ;;  %s1772_s2 = inlined_call_operand.vmem [shape: f32[1,128], index: 2, kind: input, shape index: {}]   ;;  %s1773_s3 = inlined_call_operand.vmem [shape: bf16[2744,128], index: 3, kind: output, shape index: {}]  }
   0x1 LB: > { %s1026_s13 = sadd.s32 4294967295, %s1524_s12   ;;  %p1030_p0 = scmp.ge.s32.totalorder %s1524_s12, 1  ;;  %s1524_s12 = sphi %s1548_s12, %s13_s12  }
   0x2   : > { %p138_p1 = scmp.lt.s32.totalorder %s1524_s12, 8 }
   0x4   : > { %p139_p2 = pnand %p1030_p0, %p138_p1 }
   0x5   : > { %v1485_v0 = vld [vmem:[%s1771_s1] sm:$0xff] (!%p139_p2)   ;;  %v1526_v1 = vmov (!%p139_p2), 0.0   ;;  %v1486_v2 = vld [vmem:[%s1771_s1 + $0x8] sm:$0xff] (!%p139_p2)   ;;  %s162_s18 = smul.u32 (!%p139_p2), 49, %s1026_s13  ;;  %vm1527_vm0 = vmmov (!%p139_p2), 0   ;;  %v1487_v3 = vld [vmem:[%s1771_s1 + $0x10] sm:$0xff] (!%p139_p2)  }
   0x6   : > { %142 = sbr.rel (%p139_p2) target bundleno = 355 (0x163), region = 32  ;;  %1343 = vmatprep.subr.bf16.mxu0 (!%p139_p2), %v1526_v1  ;;  %1459 = vmatprep.subr.bf16.mxu1 (!%p139_p2), %v1526_v1  ;;  %v1488_v4 = vld [vmem:[%s1771_s1 + $0x18] sm:$0xff] (!%p139_p2)   ;;  %v1489_v5 = vld [vmem:[%s1771_s1 + $0x20] sm:$0xff] (!%p139_p2)   ;;  %v1490_v6 = vld [vmem:[%s1771_s1 + $0x28] sm:$0xff] (!%p139_p2)  }
   0x7   : > { %1344 = vmatpush3.bf16.msra.mxu0 (!%p139_p2), %v1485_v0  ;;  %1467 = vmatpush3.bf16.msra.mxu1 (!%p139_p2), %v1485_v0  ;;  %p163_p3 = scmp.lt.s32.totalorder (!%p139_p2), %s162_s18, 342  ;;  %v1491_v7 = vld [vmem:[%s1771_s1 + $0x30] sm:$0xff] (!%p139_p2)   ;;  %v1492_v8 = vld [vmem:[%s1771_s1 + $0x38] sm:$0xff] (!%p139_p2)   ;;  %v1684_v34 = vld [vmem:[%s1772_s2] ss:$0 sm:$0xff] (!%p139_p2) }
   0x8   : > { %1345 = vmatprep.subr.bf16.mxu0 (!%p139_p2), %v1526_v1  ;;  %1460 = vmatprep.subr.bf16.mxu1 (!%p139_p2), %v1526_v1 }
   0x9   : > { %1359 = vmatprep.mubr.msk.bf16.mxu0 (!%p139_p2), %vm1527_vm0, %v1526_v1  ;;  %1411 = vmatprep.mubr.msk.bf16.mxu1 (!%p139_p2), %vm1527_vm0, %v1526_v1 }
   0xb   : > { %1346 = vmatpush3.bf16.msra.mxu0 (!%p139_p2), %v1486_v2  ;;  %1468 = vmatpush3.bf16.msra.mxu1 (!%p139_p2), %v1486_v2 }
   0xc   : > { %1347 = vmatprep.subr.bf16.mxu0 (!%p139_p2), %v1526_v1  ;;  %1461 = vmatprep.subr.bf16.mxu1 (!%p139_p2), %v1526_v1 }
   0xd   : > { %s1775_s18 = smov (!%p163_p3, %s162_s18), 342 }
   0xe   : > { %s1031_s21 = sshll.u32 %s1775_s18, 2 }
   0xf   : > { %s1583_s24 = scalar_lea.vmem %s1770_s0, %s1031_s21  ;;  %1348 = vmatpush3.bf16.msra.mxu0 %v1487_v3  ;;  %1469 = vmatpush3.bf16.msra.mxu1 %v1487_v3  ;;  %s1695_s13 = scalar_lea.vmem %s1773_s3, %s1031_s21 }
  0x10   : > { %1349 = vmatprep.subr.bf16.mxu0 %v1526_v1  ;;  %1462 = vmatprep.subr.bf16.mxu1 %v1526_v1  ;;  %v1493_v9 = vld [vmem:[%s1583_s24] sm:$0xff]   ;;  %v1494_v10 = vld [vmem:[%s1583_s24 + $0x68] sm:$0xff]   ;;  %v1496_v12 = vld [vmem:[%s1583_s24 + $0x70] sm:$0xff]  }
  0x11   : > { %v1495_v11 = vld [vmem:[%s1583_s24 + $0x8] sm:$0xff]   ;;  %v1497_v13 = vld [vmem:[%s1583_s24 + $0x10] sm:$0xff]   ;;  %v1498_v14 = vld [vmem:[%s1583_s24 + $0x78] sm:$0xff]  }
  0x12   : > { %v1499_v15 = vld [vmem:[%s1583_s24 + $0x18] sm:$0xff]   ;;  %v1500_v16 = vld [vmem:[%s1583_s24 + $0x80] sm:$0xff]   ;;  %v1502_v18 = vld [vmem:[%s1583_s24 + $0x88] sm:$0xff]  }
  0x13   : > { %1350 = vmatpush3.bf16.msra.mxu0 %v1488_v4  ;;  %1470 = vmatpush3.bf16.msra.mxu1 %v1488_v4  ;;  %v1501_v17 = vld [vmem:[%s1583_s24 + $0x20] sm:$0xff]   ;;  %v1503_v19 = vld [vmem:[%s1583_s24 + $0x28] sm:$0xff]   ;;  %v1504_v20 = vld [vmem:[%s1583_s24 + $0x90] sm:$0xff]  }
  0x14   : > { %1351 = vmatprep.subr.bf16.mxu0 %v1526_v1  ;;  %1463 = vmatprep.subr.bf16.mxu1 %v1526_v1  ;;  %v1505_v21 = vld [vmem:[%s1583_s24 + $0x30] sm:$0xff]   ;;  %v1506_v22 = vld [vmem:[%s1583_s24 + $0x98] sm:$0xff]   ;;  %v1508_v24 = vld [vmem:[%s1583_s24 + $0xa0] sm:$0xff]  }
  0x15   : > { %v1507_v23 = vld [vmem:[%s1583_s24 + $0x38] sm:$0xff]   ;;  %v1509_v25 = vld [vmem:[%s1583_s24 + $0x40] sm:$0xff]   ;;  %v1510_v26 = vld [vmem:[%s1583_s24 + $0xa8] sm:$0xff]  }
  0x16   : > { %v1511_v27 = vld [vmem:[%s1583_s24 + $0x48] sm:$0xff]   ;;  %v1512_v28 = vld [vmem:[%s1583_s24 + $0xb0] sm:$0xff]   ;;  %v1514_v30 = vld [vmem:[%s1583_s24 + $0xb8] sm:$0xff]  }
  0x17   : > { %1352 = vmatpush3.bf16.msra.mxu0 %v1489_v5  ;;  %1471 = vmatpush3.bf16.msra.mxu1 %v1489_v5  ;;  %v1513_v29 = vld [vmem:[%s1583_s24 + $0x50] sm:$0xff]   ;;  %v1515_v31 = vld [vmem:[%s1583_s24 + $0x58] sm:$0xff]   ;;  %v1516_v32 = vld [vmem:[%s1583_s24 + $0xc0] ss:$0 sps:$4 sm:$0xff]  }
  0x18   : > { %1353 = vmatprep.subr.bf16.mxu0 %v1526_v1  ;;  %1464 = vmatprep.subr.bf16.mxu1 %v1526_v1  ;;  %v1517_v33 = vld [vmem:[%s1583_s24 + $0x60] sm:$0xff]  }
  0x1b   : > { %1354 = vmatpush3.bf16.msra.mxu0 %v1490_v6  ;;  %1472 = vmatpush3.bf16.msra.mxu1 %v1490_v6 }
  0x1c   : > { %1355 = vmatprep.subr.bf16.mxu0 %v1526_v1  ;;  %1465 = vmatprep.subr.bf16.mxu1 %v1526_v1 }
  0x1f   : > { %1356 = vmatpush3.bf16.msra.mxu0 %v1491_v7  ;;  %1473 = vmatpush3.bf16.msra.mxu1 %v1491_v7 }
  0x20   : > { %1357 = vmatprep.subr.bf16.mxu0 %v1526_v1  ;;  %1466 = vmatprep.subr.bf16.mxu1 %v1526_v1 }
  0x23   : > { %1358 = vmatpush3.bf16.msra.mxu0 %v1492_v8  ;;  %1474 = vmatpush3.bf16.msra.mxu1 %v1492_v8 }
  0x26   : > { %1360 = vmatmul.mubr.bf16.vlgmr.msra.gmra.mrb[0].mxu0 %v1493_v9  ;;  %1412 = vmatmul.mubr.bf16.vlgmr.msra.gmra.mrb[0].mxu1 %v1494_v10 }
  0x27   : > { %1363 = vmatprep.mubr.msk.bf16.mxu0 %vm1527_vm0, %v1526_v1  ;;  %1415 = vmatprep.mubr.msk.bf16.mxu1 %vm1527_vm0, %v1526_v1 }
  0x2e   : > { %1364 = vmatmul.mubr.bf16.gmra.mrb[4].mxu0 %v1495_v11  ;;  %1416 = vmatmul.mubr.bf16.gmra.mrb[4].mxu1 %v1496_v12 }
  0x2f   : > { %1367 = vmatprep.mubr.msk.bf16.mxu0 %vm1527_vm0, %v1526_v1  ;;  %1419 = vmatprep.mubr.msk.bf16.mxu1 %vm1527_vm0, %v1526_v1 }
  0x36   : > { %1368 = vmatmul.mubr.bf16.gmra.mrb[8].mxu0 %v1497_v13  ;;  %1420 = vmatmul.mubr.bf16.gmra.mrb[8].mxu1 %v1498_v14 }
  0x37   : > { %1371 = vmatprep.mubr.msk.bf16.mxu0 %vm1527_vm0, %v1526_v1  ;;  %1423 = vmatprep.mubr.msk.bf16.mxu1 %vm1527_vm0, %v1526_v1 }
  0x3e   : > { %1372 = vmatmul.mubr.bf16.gmra.mrb[12].mxu0 %v1499_v15  ;;  %1424 = vmatmul.mubr.bf16.gmra.mrb[12].mxu1 %v1500_v16 }
  0x3f   : > { %1375 = vmatprep.mubr.msk.bf16.mxu0 %vm1527_vm0, %v1526_v1  ;;  %1427 = vmatprep.mubr.msk.bf16.mxu1 %vm1527_vm0, %v1526_v1 }
  0x46   : > { %1376 = vmatmul.mubr.bf16.gmra.mrb[16].mxu0 %v1501_v17  ;;  %1428 = vmatmul.mubr.bf16.gmra.mrb[16].mxu1 %v1502_v18 }
  0x47   : > { %1379 = vmatprep.mubr.msk.bf16.mxu0 %vm1527_vm0, %v1526_v1  ;;  %1431 = vmatprep.mubr.msk.bf16.mxu1 %vm1527_vm0, %v1526_v1 }
  0x4e   : > { %1380 = vmatmul.mubr.bf16.gmra.mrb[20].mxu0 %v1503_v19  ;;  %1432 = vmatmul.mubr.bf16.gmra.mrb[20].mxu1 %v1504_v20 }
  0x4f   : > { %1383 = vmatprep.mubr.msk.bf16.mxu0 %vm1527_vm0, %v1526_v1  ;;  %1435 = vmatprep.mubr.msk.bf16.mxu1 %vm1527_vm0, %v1526_v1 }
  0x56   : > { %1384 = vmatmul.mubr.bf16.gmra.mrb[24].mxu0 %v1505_v21  ;;  %1436 = vmatmul.mubr.bf16.gmra.mrb[24].mxu1 %v1506_v22 }
  0x57   : > { %1387 = vmatprep.mubr.msk.bf16.mxu0 %vm1527_vm0, %v1526_v1  ;;  %1439 = vmatprep.mubr.msk.bf16.mxu1 %vm1527_vm0, %v1526_v1 }
  0x5e   : > { %1388 = vmatmul.mubr.bf16.gmra.mrb[28].mxu0 %v1507_v23  ;;  %1440 = vmatmul.mubr.bf16.gmra.mrb[28].mxu1 %v1508_v24 }
  0x5f   : > { %1391 = vmatprep.mubr.msk.bf16.mxu0 %vm1527_vm0, %v1526_v1  ;;  %1443 = vmatprep.mubr.msk.bf16.mxu1 %vm1527_vm0, %v1526_v1 }
  0x66   : > { %1392 = vmatmul.mubr.bf16.gmra.mrb[32].mxu0 %v1509_v25  ;;  %1444 = vmatmul.mubr.bf16.gmra.mrb[32].mxu1 %v1510_v26 }
  0x67   : > { %1395 = vmatprep.mubr.msk.bf16.mxu0 %vm1527_vm0, %v1526_v1  ;;  %1447 = vmatprep.mubr.msk.bf16.mxu1 %vm1527_vm0, %v1526_v1 }
  0x6e   : > { %1396 = vmatmul.mubr.bf16.gmra.mrb[36].mxu0 %v1511_v27  ;;  %1448 = vmatmul.mubr.bf16.gmra.mrb[36].mxu1 %v1512_v28 }
  0x6f   : > { %1399 = vmatprep.mubr.msk.bf16.mxu0 %vm1527_vm0, %v1526_v1  ;;  %1451 = vmatprep.mubr.msk.bf16.mxu1 %vm1527_vm0, %v1526_v1 }
  0x76   : > { %1400 = vmatmul.mubr.bf16.gmra.mrb[40].mxu0 %v1513_v29  ;;  %1452 = vmatmul.mubr.bf16.gmra.mrb[40].mxu1 %v1514_v30 }
  0x77   : > { %1403 = vmatprep.mubr.msk.bf16.mxu0 %vm1527_vm0, %v1526_v1  ;;  %1455 = vmatprep.mubr.msk.bf16.mxu1 %vm1527_vm0, %v1526_v1 }
  0x7e   : > { %1404 = vmatmul.mubr.bf16.gmra.mrb[44].mxu0 %v1515_v31  ;;  %1456 = vmatmul.mubr.bf16.gmra.mrb[44].mxu1 %v1516_v32 }
  0x7f   : > { %1407 = vmatprep.mubr.msk.bf16.mxu0 %vm1527_vm0, %v1526_v1 }
  0x86   : > { %1408 = vmatmul.mubr.bf16.gmra.mrb[48].mxu0 %v1517_v33 }
  0xf9   : > { %v477_v35 = vpop.f32.mrb[0].mxu0  ;;  %v581_v36 = vpop.f32.mrb[0].mxu1 }
  0xfa   : > { %v478_v37 = vadd.f32 %v1684_v34, %v477_v35  ;;  %v1361_v38 = vpop.f32.mrb[1].mxu0  ;;  %v582_v39 = vadd.f32 %v1684_v34, %v581_v36  ;;  %v1413_v40 = vpop.f32.mrb[1].mxu1 }
  0xfb   : > { %v480_v41 = vpop.f32.mrb[2].mxu0  ;;  %v584_v42 = vpop.f32.mrb[2].mxu1 }
  0xfc   : > { %v481_v43 = vadd.f32 %v1684_v34, %v480_v41  ;;  %v1362_v44 = vpop.f32.mrb[3].mxu0  ;;  %v701_v45 = vmax.f32 %v582_v39, 0.0  ;;  %v585_v46 = vadd.f32 %v1684_v34, %v584_v42  ;;  %v1414_v47 = vpop.f32.mrb[3].mxu1  ;;  %v675_v48 = vmax.f32 %v478_v37, 0.0 }
  0xfe   : > { %v676_v49 = vmax.f32 %v481_v43, 0.0  ;;  %v702_v50 = vmax.f32 %v585_v46, 0.0 }
 0x100   : > { %v1170_v51 = vpack.c.bf16 %v676_v49, %v675_v48  ;;  %v1235_v52 = vpack.c.bf16 %v702_v50, %v701_v45 }
 0x101   : > { %v485_v53 = vpop.f32.mrb[4].mxu0  ;;  %v589_v54 = vpop.f32.mrb[4].mxu1 }
 0x102   : > { %1171 = vst [vmem:[%s1695_s13] sm:$0xff] %v1170_v51   ;;  %v486_v55 = vadd.f32 %v1684_v34, %v485_v53  ;;  %v1365_v56 = vpop.f32.mrb[5].mxu0  ;;  %1299 = vst [vmem:[%s1695_s13 + $0x68] sm:$0xff] %v1235_v52   ;;  %v590_v57 = vadd.f32 %v1684_v34, %v589_v54  ;;  %v1417_v58 = vpop.f32.mrb[5].mxu1 }
 0x103   : > { %v488_v59 = vpop.f32.mrb[6].mxu0  ;;  %v592_v60 = vpop.f32.mrb[6].mxu1 }
 0x104   : > { %v489_v61 = vadd.f32 %v1684_v34, %v488_v59  ;;  %v1366_v62 = vpop.f32.mrb[7].mxu0  ;;  %v703_v63 = vmax.f32 %v590_v57, 0.0  ;;  %v593_v0 = vadd.f32 %v1684_v34, %v592_v60  ;;  %v1418_v1 = vpop.f32.mrb[7].mxu1  ;;  %v677_v2 = vmax.f32 %v486_v55, 0.0 }
 0x106   : > { %v678_v3 = vmax.f32 %v489_v61, 0.0  ;;  %v704_v4 = vmax.f32 %v593_v0, 0.0 }
 0x108   : > { %v1175_v5 = vpack.c.bf16 %v678_v3, %v677_v2  ;;  %v1240_v6 = vpack.c.bf16 %v704_v4, %v703_v63 }
 0x109   : > { %v493_v7 = vpop.f32.mrb[8].mxu0  ;;  %v597_v8 = vpop.f32.mrb[8].mxu1 }
 0x10a   : > { %1287 = vst [vmem:[%s1695_s13 + $0x8] sm:$0xff] %v1175_v5   ;;  %v494_v9 = vadd.f32 %v1684_v34, %v493_v7  ;;  %v1369_v10 = vpop.f32.mrb[9].mxu0  ;;  %1300 = vst [vmem:[%s1695_s13 + $0x70] sm:$0xff] %v1240_v6   ;;  %v598_v11 = vadd.f32 %v1684_v34, %v597_v8  ;;  %v1421_v12 = vpop.f32.mrb[9].mxu1 }
 0x10b   : > { %v496_v13 = vpop.f32.mrb[10].mxu0  ;;  %v600_v14 = vpop.f32.mrb[10].mxu1 }
 0x10c   : > { %v497_v15 = vadd.f32 %v1684_v34, %v496_v13  ;;  %v1370_v16 = vpop.f32.mrb[11].mxu0  ;;  %v705_v17 = vmax.f32 %v598_v11, 0.0  ;;  %v601_v18 = vadd.f32 %v1684_v34, %v600_v14  ;;  %v1422_v19 = vpop.f32.mrb[11].mxu1  ;;  %v679_v20 = vmax.f32 %v494_v9, 0.0 }
 0x10e   : > { %v680_v21 = vmax.f32 %v497_v15, 0.0  ;;  %v706_v22 = vmax.f32 %v601_v18, 0.0 }
 0x110   : > { %v1180_v23 = vpack.c.bf16 %v680_v21, %v679_v20  ;;  %v1245_v24 = vpack.c.bf16 %v706_v22, %v705_v17 }
 0x111   : > { %v501_v25 = vpop.f32.mrb[12].mxu0  ;;  %v605_v26 = vpop.f32.mrb[12].mxu1 }
 0x112   : > { %1288 = vst [vmem:[%s1695_s13 + $0x10] sm:$0xff] %v1180_v23   ;;  %v502_v27 = vadd.f32 %v1684_v34, %v501_v25  ;;  %v1373_v28 = vpop.f32.mrb[13].mxu0  ;;  %1301 = vst [vmem:[%s1695_s13 + $0x78] sm:$0xff] %v1245_v24   ;;  %v606_v29 = vadd.f32 %v1684_v34, %v605_v26  ;;  %v1425_v30 = vpop.f32.mrb[13].mxu1 }
 0x113   : > { %v504_v31 = vpop.f32.mrb[14].mxu0  ;;  %v608_v32 = vpop.f32.mrb[14].mxu1 }
 0x114   : > { %v505_v33 = vadd.f32 %v1684_v34, %v504_v31  ;;  %v1374_v35 = vpop.f32.mrb[15].mxu0  ;;  %v707_v36 = vmax.f32 %v606_v29, 0.0  ;;  %v609_v37 = vadd.f32 %v1684_v34, %v608_v32  ;;  %v1426_v38 = vpop.f32.mrb[15].mxu1  ;;  %v681_v39 = vmax.f32 %v502_v27, 0.0 }
 0x116   : > { %v682_v40 = vmax.f32 %v505_v33, 0.0  ;;  %v708_v41 = vmax.f32 %v609_v37, 0.0 }
 0x118   : > { %v1185_v42 = vpack.c.bf16 %v682_v40, %v681_v39  ;;  %v1250_v43 = vpack.c.bf16 %v708_v41, %v707_v36 }
 0x119   : > { %v509_v44 = vpop.f32.mrb[16].mxu0  ;;  %v613_v45 = vpop.f32.mrb[16].mxu1 }
 0x11a   : > { %1289 = vst [vmem:[%s1695_s13 + $0x18] sm:$0xff] %v1185_v42   ;;  %v510_v46 = vadd.f32 %v1684_v34, %v509_v44  ;;  %v1377_v47 = vpop.f32.mrb[17].mxu0  ;;  %1302 = vst [vmem:[%s1695_s13 + $0x80] sm:$0xff] %v1250_v43   ;;  %v614_v48 = vadd.f32 %v1684_v34, %v613_v45  ;;  %v1429_v49 = vpop.f32.mrb[17].mxu1 }
 0x11b   : > { %v512_v50 = vpop.f32.mrb[18].mxu0  ;;  %v616_v51 = vpop.f32.mrb[18].mxu1 }
 0x11c   : > { %v513_v52 = vadd.f32 %v1684_v34, %v512_v50  ;;  %v1378_v53 = vpop.f32.mrb[19].mxu0  ;;  %v709_v54 = vmax.f32 %v614_v48, 0.0  ;;  %v617_v55 = vadd.f32 %v1684_v34, %v616_v51  ;;  %v1430_v56 = vpop.f32.mrb[19].mxu1  ;;  %v683_v57 = vmax.f32 %v510_v46, 0.0 }
 0x11e   : > { %v684_v58 = vmax.f32 %v513_v52, 0.0  ;;  %v710_v59 = vmax.f32 %v617_v55, 0.0 }
 0x120   : > { %v1190_v60 = vpack.c.bf16 %v684_v58, %v683_v57  ;;  %v1255_v61 = vpack.c.bf16 %v710_v59, %v709_v54 }
 0x121   : > { %v517_v62 = vpop.f32.mrb[20].mxu0  ;;  %v621_v63 = vpop.f32.mrb[20].mxu1 }
 0x122   : > { %1290 = vst [vmem:[%s1695_s13 + $0x20] sm:$0xff] %v1190_v60   ;;  %v518_v0 = vadd.f32 %v1684_v34, %v517_v62  ;;  %v1381_v1 = vpop.f32.mrb[21].mxu0  ;;  %1303 = vst [vmem:[%s1695_s13 + $0x88] sm:$0xff] %v1255_v61   ;;  %v622_v2 = vadd.f32 %v1684_v34, %v621_v63  ;;  %v1433_v3 = vpop.f32.mrb[21].mxu1 }
 0x123   : > { %v520_v4 = vpop.f32.mrb[22].mxu0  ;;  %v624_v5 = vpop.f32.mrb[22].mxu1 }
 0x124   : > { %v521_v6 = vadd.f32 %v1684_v34, %v520_v4  ;;  %v1382_v7 = vpop.f32.mrb[23].mxu0  ;;  %v711_v8 = vmax.f32 %v622_v2, 0.0  ;;  %v625_v9 = vadd.f32 %v1684_v34, %v624_v5  ;;  %v1434_v10 = vpop.f32.mrb[23].mxu1  ;;  %v685_v11 = vmax.f32 %v518_v0, 0.0 }
 0x126   : > { %v686_v12 = vmax.f32 %v521_v6, 0.0  ;;  %v712_v13 = vmax.f32 %v625_v9, 0.0 }
 0x128   : > { %v1195_v14 = vpack.c.bf16 %v686_v12, %v685_v11  ;;  %v1260_v15 = vpack.c.bf16 %v712_v13, %v711_v8 }
 0x129   : > { %v525_v16 = vpop.f32.mrb[24].mxu0  ;;  %v629_v17 = vpop.f32.mrb[24].mxu1 }
 0x12a   : > { %1291 = vst [vmem:[%s1695_s13 + $0x28] sm:$0xff] %v1195_v14   ;;  %v526_v18 = vadd.f32 %v1684_v34, %v525_v16  ;;  %v1385_v19 = vpop.f32.mrb[25].mxu0  ;;  %1304 = vst [vmem:[%s1695_s13 + $0x90] sm:$0xff] %v1260_v15   ;;  %v630_v20 = vadd.f32 %v1684_v34, %v629_v17  ;;  %v1437_v21 = vpop.f32.mrb[25].mxu1 }
 0x12b   : > { %v528_v22 = vpop.f32.mrb[26].mxu0  ;;  %v632_v23 = vpop.f32.mrb[26].mxu1 }
 0x12c   : > { %v529_v24 = vadd.f32 %v1684_v34, %v528_v22  ;;  %v1386_v25 = vpop.f32.mrb[27].mxu0  ;;  %v713_v26 = vmax.f32 %v630_v20, 0.0  ;;  %v633_v27 = vadd.f32 %v1684_v34, %v632_v23  ;;  %v1438_v28 = vpop.f32.mrb[27].mxu1  ;;  %v687_v29 = vmax.f32 %v526_v18, 0.0 }
 0x12e   : > { %v688_v30 = vmax.f32 %v529_v24, 0.0  ;;  %v714_v31 = vmax.f32 %v633_v27, 0.0 }
 0x130   : > { %v1200_v32 = vpack.c.bf16 %v688_v30, %v687_v29  ;;  %v1265_v33 = vpack.c.bf16 %v714_v31, %v713_v26 }
 0x131   : > { %v533_v35 = vpop.f32.mrb[28].mxu0  ;;  %v637_v36 = vpop.f32.mrb[28].mxu1 }
 0x132   : > { %1292 = vst [vmem:[%s1695_s13 + $0x30] sm:$0xff] %v1200_v32   ;;  %v534_v37 = vadd.f32 %v1684_v34, %v533_v35  ;;  %v1389_v38 = vpop.f32.mrb[29].mxu0  ;;  %1305 = vst [vmem:[%s1695_s13 + $0x98] sm:$0xff] %v1265_v33   ;;  %v638_v39 = vadd.f32 %v1684_v34, %v637_v36  ;;  %v1441_v40 = vpop.f32.mrb[29].mxu1 }
 0x133   : > { %v536_v41 = vpop.f32.mrb[30].mxu0  ;;  %v640_v42 = vpop.f32.mrb[30].mxu1 }
 0x134   : > { %v537_v43 = vadd.f32 %v1684_v34, %v536_v41  ;;  %v1390_v44 = vpop.f32.mrb[31].mxu0  ;;  %v715_v45 = vmax.f32 %v638_v39, 0.0  ;;  %v641_v46 = vadd.f32 %v1684_v34, %v640_v42  ;;  %v1442_v47 = vpop.f32.mrb[31].mxu1  ;;  %v689_v48 = vmax.f32 %v534_v37, 0.0 }
 0x136   : > { %v690_v49 = vmax.f32 %v537_v43, 0.0  ;;  %v716_v50 = vmax.f32 %v641_v46, 0.0 }
 0x138   : > { %v1205_v51 = vpack.c.bf16 %v690_v49, %v689_v48  ;;  %v1270_v52 = vpack.c.bf16 %v716_v50, %v715_v45 }
 0x139   : > { %v541_v53 = vpop.f32.mrb[32].mxu0  ;;  %v645_v54 = vpop.f32.mrb[32].mxu1 }
 0x13a   : > { %1293 = vst [vmem:[%s1695_s13 + $0x38] sm:$0xff] %v1205_v51   ;;  %v542_v55 = vadd.f32 %v1684_v34, %v541_v53  ;;  %v1393_v56 = vpop.f32.mrb[33].mxu0  ;;  %1306 = vst [vmem:[%s1695_s13 + $0xa0] sm:$0xff] %v1270_v52   ;;  %v646_v57 = vadd.f32 %v1684_v34, %v645_v54  ;;  %v1445_v58 = vpop.f32.mrb[33].mxu1 }
 0x13b   : > { %v544_v59 = vpop.f32.mrb[34].mxu0  ;;  %v648_v60 = vpop.f32.mrb[34].mxu1 }
 0x13c   : > { %v545_v61 = vadd.f32 %v1684_v34, %v544_v59  ;;  %v1394_v62 = vpop.f32.mrb[35].mxu0  ;;  %v717_v63 = vmax.f32 %v646_v57, 0.0  ;;  %v649_v0 = vadd.f32 %v1684_v34, %v648_v60  ;;  %v1446_v1 = vpop.f32.mrb[35].mxu1  ;;  %v691_v2 = vmax.f32 %v542_v55, 0.0 }
 0x13e   : > { %v692_v3 = vmax.f32 %v545_v61, 0.0  ;;  %v718_v4 = vmax.f32 %v649_v0, 0.0 }
 0x140   : > { %v1210_v5 = vpack.c.bf16 %v692_v3, %v691_v2  ;;  %v1275_v6 = vpack.c.bf16 %v718_v4, %v717_v63 }
 0x141   : > { %v549_v7 = vpop.f32.mrb[36].mxu0  ;;  %v653_v8 = vpop.f32.mrb[36].mxu1 }
 0x142   : > { %1294 = vst [vmem:[%s1695_s13 + $0x40] sm:$0xff] %v1210_v5   ;;  %v550_v9 = vadd.f32 %v1684_v34, %v549_v7  ;;  %v1397_v10 = vpop.f32.mrb[37].mxu0  ;;  %1307 = vst [vmem:[%s1695_s13 + $0xa8] sm:$0xff] %v1275_v6   ;;  %v654_v11 = vadd.f32 %v1684_v34, %v653_v8  ;;  %v1449_v12 = vpop.f32.mrb[37].mxu1 }
 0x143   : > { %v552_v13 = vpop.f32.mrb[38].mxu0  ;;  %v656_v14 = vpop.f32.mrb[38].mxu1 }
 0x144   : > { %v553_v15 = vadd.f32 %v1684_v34, %v552_v13  ;;  %v1398_v16 = vpop.f32.mrb[39].mxu0  ;;  %v719_v17 = vmax.f32 %v654_v11, 0.0  ;;  %v657_v18 = vadd.f32 %v1684_v34, %v656_v14  ;;  %v1450_v19 = vpop.f32.mrb[39].mxu1  ;;  %v693_v20 = vmax.f32 %v550_v9, 0.0 }
 0x146   : > { %v694_v21 = vmax.f32 %v553_v15, 0.0  ;;  %v720_v22 = vmax.f32 %v657_v18, 0.0 }
 0x148   : > { %v1215_v23 = vpack.c.bf16 %v694_v21, %v693_v20  ;;  %v1280_v24 = vpack.c.bf16 %v720_v22, %v719_v17 }
 0x149   : > { %v557_v25 = vpop.f32.mrb[40].mxu0  ;;  %v661_v26 = vpop.f32.mrb[40].mxu1 }
 0x14a   : > { %1295 = vst [vmem:[%s1695_s13 + $0x48] sm:$0xff] %v1215_v23   ;;  %v558_v27 = vadd.f32 %v1684_v34, %v557_v25  ;;  %v1401_v28 = vpop.f32.mrb[41].mxu0  ;;  %1308 = vst [vmem:[%s1695_s13 + $0xb0] sm:$0xff] %v1280_v24   ;;  %v662_v29 = vadd.f32 %v1684_v34, %v661_v26  ;;  %v1453_v30 = vpop.f32.mrb[41].mxu1 }
 0x14b   : > { %v560_v31 = vpop.f32.mrb[42].mxu0  ;;  %v664_v32 = vpop.f32.mrb[42].mxu1 }
 0x14c   : > { %v561_v33 = vadd.f32 %v1684_v34, %v560_v31  ;;  %v1402_v35 = vpop.f32.mrb[43].mxu0  ;;  %v721_v36 = vmax.f32 %v662_v29, 0.0  ;;  %v665_v37 = vadd.f32 %v1684_v34, %v664_v32  ;;  %v1454_v38 = vpop.f32.mrb[43].mxu1  ;;  %v695_v39 = vmax.f32 %v558_v27, 0.0 }
 0x14e   : > { %v696_v40 = vmax.f32 %v561_v33, 0.0  ;;  %v722_v41 = vmax.f32 %v665_v37, 0.0 }
 0x150   : > { %v1220_v42 = vpack.c.bf16 %v696_v40, %v695_v39  ;;  %v1285_v43 = vpack.c.bf16 %v722_v41, %v721_v36 }
 0x151   : > { %v565_v44 = vpop.f32.mrb[44].mxu0  ;;  %v669_v45 = vpop.f32.mrb[44].mxu1 }
 0x152   : > { %1296 = vst [vmem:[%s1695_s13 + $0x50] sm:$0xff] %v1220_v42   ;;  %v566_v46 = vadd.f32 %v1684_v34, %v565_v44  ;;  %v1405_v47 = vpop.f32.mrb[45].mxu0  ;;  %1309 = vst [vmem:[%s1695_s13 + $0xb8] sm:$0xff] %v1285_v43   ;;  %v670_v48 = vadd.f32 %v1684_v34, %v669_v45  ;;  %v1457_v49 = vpop.f32.mrb[45].mxu1 }
 0x153   : > { %v568_v50 = vpop.f32.mrb[46].mxu0  ;;  %v672_v51 = vpop.f32.mrb[46].mxu1 }
 0x154   : > { %v569_v52 = vadd.f32 %v1684_v34, %v568_v50  ;;  %v1406_v53 = vpop.f32.mrb[47].mxu0  ;;  %v723_v54 = vmax.f32 %v670_v48, 0.0  ;;  %v1458_v55 = vpop.f32.mrb[47].mxu1  ;;  %v697_v56 = vmax.f32 %v566_v46, 0.0 }
 0x156   : > { %v698_v57 = vmax.f32 %v569_v52, 0.0  ;;  %v1166_v58 = vpack.c.bf16 %v723_v54, %v723_v54 }
 0x158   : > { %v1225_v59 = vpack.c.bf16 %v698_v57, %v697_v56  ;;  %969 = vst [vmem:[%s1695_s13 + $0xc0] sm:$0xf] %v1166_v58 }
 0x159   : > { %v573_v60 = vpop.f32.mrb[48].mxu0 }
 0x15a   : > { %1297 = vst [vmem:[%s1695_s13 + $0x58] sm:$0xff] %v1225_v59   ;;  %v574_v61 = vadd.f32 %v1684_v34, %v573_v60  ;;  %v1409_v62 = vpop.f32.mrb[49].mxu0 }
 0x15b   : > { %v576_v63 = vpop.f32.mrb[50].mxu0 }
 0x15c   : > { %v577_v0 = vadd.f32 %v1684_v34, %v576_v63  ;;  %v1410_v1 = vpop.f32.mrb[51].mxu0  ;;  %v699_v2 = vmax.f32 %v574_v61, 0.0 }
 0x15e   : > { %v700_v3 = vmax.f32 %v577_v0, 0.0 }
 0x160   : > { %v1230_v4 = vpack.c.bf16 %v700_v3, %v699_v2 }
 0x162   : > { %1298 = vst [vmem:[%s1695_s13 + $0x60] sm:$0xff] %v1230_v4  }
 0x163 PF: > { %s13_s12 = sadd.s32 1, %s1524_s12  }
 0x164   : > { %p10_p4 = scmp.ge.s32.totalorder %s13_s12, 9  }
 0x166   :  { %12 = sbr.rel (!%p10_p4) target bundleno = 1 (0x1), region = 62 }

// kernel: _lambda_.4
= control target key start
LH: loop header
LB: loop body
LE: loop exit
PB: predicated region body
PF: predicated region fallthrough
CT: control target
= control target key end

     0   :  { %s1462_s12 = smov 0   ;;  %s1653_s0 = inlined_call_operand.vmem [shape: bf16[288,512], index: 0, kind: input, shape index: {}]   ;;  %s1654_s1 = inlined_call_operand.vmem [shape: bf16[512,128], index: 1, kind: input, shape index: {}]   ;;  %s1655_s2 = inlined_call_operand.vmem [shape: f32[1,128], index: 2, kind: input, shape index: {}]   ;;  %s1656_s3 = inlined_call_operand.vmem [shape: bf16[288,128], index: 3, kind: output, shape index: {}]  }
   0x1 LB: > { %s1031_s13 = sadd.s32 4294967295, %s1440_s12   ;;  %p1035_p0 = scmp.ge.s32.totalorder %s1440_s12, 1  ;;  %s1440_s12 = sphi %s1462_s12, %s13_s12  }
   0x2   : > { %p139_p1 = scmp.lt.s32.totalorder %s1440_s12, 3 }
   0x4   : > { %p140_p2 = pnand %p1035_p0, %p139_p1 }
   0x5   : > { %v1348_v0 = vld [vmem:[%s1654_s1 + $0x40] sm:$0xff] (!%p140_p2)   ;;  %v1352_v4 = vld [vmem:[%s1654_s1 + $0x48] sm:$0xff] (!%p140_p2)   ;;  %v1356_v8 = vld [vmem:[%s1654_s1 + $0x50] sm:$0xff] (!%p140_p2)   ;;  %s164_s19 = smul.u32 (!%p140_p2), 18, %s1031_s13 }
   0x6   : > { %143 = sbr.rel (%p140_p2) target bundleno = 329 (0x149), region = 32  ;;  %v1349_v1 = vld [vmem:[%s1654_s1 + $0xc0] sm:$0xff] (!%p140_p2)   ;;  %1200 = vmatprep.subr.bf16.mxu0 (!%p140_p2), %v1348_v0  ;;  %v1353_v5 = vld [vmem:[%s1654_s1 + $0xc8] sm:$0xff] (!%p140_p2)   ;;  %v1357_v9 = vld [vmem:[%s1654_s1 + $0xd0] sm:$0xff] (!%p140_p2)  }
   0x7   : > { %v1350_v2 = vld [vmem:[%s1654_s1] sm:$0xff] (!%p140_p2)   ;;  %1270 = vmatprep.subr.bf16.mxu1 (!%p140_p2), %v1349_v1  ;;  %v1354_v6 = vld [vmem:[%s1654_s1 + $0x8] sm:$0xff] (!%p140_p2)   ;;  %v1358_v10 = vld [vmem:[%s1654_s1 + $0x10] sm:$0xff] (!%p140_p2)   ;;  %p165_p3 = scmp.lt.s32.totalorder (!%p140_p2), %s164_s19, 35 }
   0x8   : > { %v1351_v3 = vld [vmem:[%s1654_s1 + $0x80] sm:$0xff] (!%p140_p2)   ;;  %1201 = vmatpush3.bf16.msra.mxu0 (!%p140_p2), %v1350_v2  ;;  %v1355_v7 = vld [vmem:[%s1654_s1 + $0x88] sm:$0xff] (!%p140_p2)   ;;  %v1359_v11 = vld [vmem:[%s1654_s1 + $0x90] sm:$0xff] (!%p140_p2)  }
   0x9   : > { %1271 = vmatpush3.bf16.msra.mxu1 (!%p140_p2), %v1351_v3  ;;  %1202 = vmatprep.subr.bf16.mxu0 (!%p140_p2), %v1352_v4  ;;  %v1360_v12 = vld [vmem:[%s1654_s1 + $0x58] sm:$0xff] (!%p140_p2)   ;;  %v1364_v16 = vld [vmem:[%s1654_s1 + $0x60] sm:$0xff] (!%p140_p2)   ;;  %v1368_v20 = vld [vmem:[%s1654_s1 + $0x68] sm:$0xff] (!%p140_p2)  }
   0xa   : > { %1272 = vmatprep.subr.bf16.mxu1 (!%p140_p2), %v1353_v5  ;;  %v1361_v13 = vld [vmem:[%s1654_s1 + $0xd8] sm:$0xff] (!%p140_p2)   ;;  %v1365_v17 = vld [vmem:[%s1654_s1 + $0xe0] sm:$0xff] (!%p140_p2)   ;;  %v1369_v21 = vld [vmem:[%s1654_s1 + $0xe8] sm:$0xff] (!%p140_p2)  }
   0xb   : > { %v1362_v14 = vld [vmem:[%s1654_s1 + $0x18] sm:$0xff] (!%p140_p2)   ;;  %v1366_v18 = vld [vmem:[%s1654_s1 + $0x20] sm:$0xff] (!%p140_p2)   ;;  %v1370_v22 = vld [vmem:[%s1654_s1 + $0x28] sm:$0xff] (!%p140_p2)  }
   0xc   : > { %1203 = vmatpush3.bf16.msra.mxu0 (!%p140_p2), %v1354_v6  ;;  %v1363_v15 = vld [vmem:[%s1654_s1 + $0x98] sm:$0xff] (!%p140_p2)   ;;  %v1367_v19 = vld [vmem:[%s1654_s1 + $0xa0] sm:$0xff] (!%p140_p2)   ;;  %v1371_v23 = vld [vmem:[%s1654_s1 + $0xa8] sm:$0xff] (!%p140_p2)  }
   0xd   : > { %1273 = vmatpush3.bf16.msra.mxu1 %v1355_v7  ;;  %1204 = vmatprep.subr.bf16.mxu0 %v1356_v8  ;;  %s1658_s19 = smov (!%p165_p3, %s164_s19), 35  ;;  %v1372_v24 = vld [vmem:[%s1654_s1 + $0x70] sm:$0xff]   ;;  %v1376_v28 = vld [vmem:[%s1654_s1 + $0x78] sm:$0xff]   ;;  %v1615_v6 = vld [vmem:[%s1655_s2] ss:$0 sm:$0xff] }
   0xe   : > { %1274 = vmatprep.subr.bf16.mxu1 %v1357_v9  ;;  %v1373_v25 = vld [vmem:[%s1654_s1 + $0xf0] sm:$0xff]   ;;  %s1128_s18 = sshll.u32 %s1658_s19, 4  ;;  %v1377_v29 = vld [vmem:[%s1654_s1 + $0xf8] sm:$0xff]   ;;  %s1038_s7 = sshll.u32 %s1658_s19, 2 }
   0xf   : > { %v1374_v26 = vld [vmem:[%s1654_s1 + $0x30] sm:$0xff]   ;;  %s1568_s13 = scalar_lea.vmem %s1653_s0, %s1128_s18  ;;  %v1378_v30 = vld [vmem:[%s1654_s1 + $0x38] sm:$0xff]   ;;  %s1623_s10 = scalar_lea.vmem %s1656_s3, %s1038_s7 }
  0x10   : > { %1205 = vmatpush3.bf16.msra.mxu0 %v1358_v10  ;;  %v1375_v27 = vld [vmem:[%s1654_s1 + $0xb0] sm:$0xff]   ;;  %v1379_v31 = vld [vmem:[%s1654_s1 + $0xb8] sm:$0xff]  }
  0x11   : > { %1275 = vmatpush3.bf16.msra.mxu1 %v1359_v11  ;;  %1206 = vmatprep.subr.bf16.mxu0 %v1360_v12  ;;  %v1380_v32 = vld [vmem:[%s1568_s13] ss:$16 sps:$4 sm:$0xff]   ;;  %v1382_v33 = vld [vmem:[%s1568_s13 + $0x4] ss:$16 sps:$4 sm:$0xff]   ;;  %v1383_v34 = vld [vmem:[%s1568_s13 + $0x8] ss:$16 sps:$4 sm:$0xff]  }
  0x12   : > { %1276 = vmatprep.subr.bf16.mxu1 %v1361_v13  ;;  %v1385_v35 = vld [vmem:[%s1568_s13 + $0xc] ss:$16 sps:$4 sm:$0xff]   ;;  %689 = vmatprep.mubr.bf16.mxu0 %v1382_v33  ;;  %v1386_v36 = vld [vmem:[%s1568_s13 + $0x24] ss:$16 sps:$4 sm:$0xff]   ;;  %v1390_v38 = vld [vmem:[%s1568_s13 + $0x20] ss:$16 sps:$4 sm:$0xff]  }
  0x13   : > { %794 = vmatprep.mubr.bf16.mxu1 %v1385_v35  ;;  %v1388_v37 = vld [vmem:[%s1568_s13 + $0x2c] ss:$16 sps:$4 sm:$0xff]   ;;  %v1391_v39 = vld [vmem:[%s1568_s13 + $0x28] ss:$16 sps:$4 sm:$0xff]   ;;  %v1392_v40 = vld [vmem:[%s1568_s13 + $0x44] ss:$16 sps:$4 sm:$0xff]  }
  0x14   : > { %1207 = vmatpush3.bf16.msra.mxu0 %v1362_v14  ;;  %v1394_v41 = vld [vmem:[%s1568_s13 + $0x4c] ss:$16 sps:$4 sm:$0xff]   ;;  %v1396_v42 = vld [vmem:[%s1568_s13 + $0x40] ss:$16 sps:$4 sm:$0xff]   ;;  %v1397_v43 = vld [vmem:[%s1568_s13 + $0x48] ss:$16 sps:$4 sm:$0xff]  }
  0x15   : > { %1277 = vmatpush3.bf16.msra.mxu1 %v1363_v15  ;;  %1208 = vmatprep.subr.bf16.mxu0 %v1364_v16  ;;  %v1398_v44 = vld [vmem:[%s1568_s13 + $0x64] ss:$16 sps:$4 sm:$0xff]   ;;  %v1400_v45 = vld [vmem:[%s1568_s13 + $0x6c] ss:$16 sps:$4 sm:$0xff]   ;;  %v1402_v46 = vld [vmem:[%s1568_s13 + $0x60] ss:$16 sps:$4 sm:$0xff]  }
  0x16   : > { %1278 = vmatprep.subr.bf16.mxu1 %v1365_v17  ;;  %v1403_v47 = vld [vmem:[%s1568_s13 + $0x68] ss:$16 sps:$4 sm:$0xff]   ;;  %v1404_v48 = vld [vmem:[%s1568_s13 + $0x84] ss:$16 sps:$4 sm:$0xff]   ;;  %v1406_v49 = vld [vmem:[%s1568_s13 + $0x8c] ss:$16 sps:$4 sm:$0xff]  }
  0x17   : > { %v1408_v50 = vld [vmem:[%s1568_s13 + $0x80] ss:$16 sps:$4 sm:$0xff]   ;;  %v1409_v51 = vld [vmem:[%s1568_s13 + $0x88] ss:$16 sps:$4 sm:$0xff]   ;;  %v1410_v52 = vld [vmem:[%s1568_s13 + $0xa4] ss:$16 sps:$4 sm:$0xff]  }
  0x18   : > { %1209 = vmatpush3.bf16.msra.mxu0 %v1366_v18  ;;  %v1412_v53 = vld [vmem:[%s1568_s13 + $0xac] ss:$16 sps:$4 sm:$0xff]   ;;  %v1414_v54 = vld [vmem:[%s1568_s13 + $0xa0] ss:$16 sps:$4 sm:$0xff]   ;;  %v1415_v55 = vld [vmem:[%s1568_s13 + $0xa8] ss:$16 sps:$4 sm:$0xff]  }
  0x19   : > { %1279 = vmatpush3.bf16.msra.mxu1 %v1367_v19  ;;  %1210 = vmatprep.subr.bf16.mxu0 %v1368_v20  ;;  %v1416_v56 = vld [vmem:[%s1568_s13 + $0xc4] ss:$16 sps:$4 sm:$0xff]   ;;  %v1418_v57 = vld [vmem:[%s1568_s13 + $0xcc] ss:$16 sps:$4 sm:$0xff]   ;;  %v1420_v58 = vld [vmem:[%s1568_s13 + $0xc0] ss:$16 sps:$4 sm:$0xff]  }
  0x1a   : > { %1280 = vmatprep.subr.bf16.mxu1 %v1369_v21  ;;  %v1421_v59 = vld [vmem:[%s1568_s13 + $0xc8] ss:$16 sps:$4 sm:$0xff]   ;;  %v1422_v60 = vld [vmem:[%s1568_s13 + $0xe4] ss:$16 sps:$4 sm:$0xff]   ;;  %v1424_v61 = vld [vmem:[%s1568_s13 + $0xec] ss:$16 sps:$4 sm:$0xff]  }
  0x1b   : > { %v1426_v62 = vld [vmem:[%s1568_s13 + $0xe0] ss:$16 sps:$4 sm:$0xff]   ;;  %v1427_v63 = vld [vmem:[%s1568_s13 + $0xe8] ss:$16 sps:$4 sm:$0xff]   ;;  %v1428_v0 = vld [vmem:[%s1568_s13 + $0x104] ss:$16 sps:$4 sm:$0xff]  }
  0x1c   : > { %1211 = vmatpush3.bf16.msra.mxu0 %v1370_v22  ;;  %v1430_v1 = vld [vmem:[%s1568_s13 + $0x10c] ss:$16 sps:$4 sm:$0xff]   ;;  %v1432_v2 = vld [vmem:[%s1568_s13 + $0x100] ss:$16 sps:$4 sm:$0xff]   ;;  %v1433_v3 = vld [vmem:[%s1568_s13 + $0x108] ss:$16 sps:$4 sm:$0xff]  }
  0x1d   : > { %1281 = vmatpush3.bf16.msra.mxu1 %v1371_v23  ;;  %1212 = vmatprep.subr.bf16.mxu0 %v1372_v24 }
  0x1e   : > { %1282 = vmatprep.subr.bf16.mxu1 %v1373_v25 }
  0x20   : > { %1213 = vmatpush3.bf16.msra.mxu0 %v1374_v26 }
  0x21   : > { %1283 = vmatpush3.bf16.msra.mxu1 %v1375_v27  ;;  %1214 = vmatprep.subr.bf16.mxu0 %v1376_v28 }
  0x22   : > { %1284 = vmatprep.subr.bf16.mxu1 %v1377_v29 }
  0x24   : > { %1215 = vmatpush3.bf16.msra.mxu0 %v1378_v30 }
  0x25   : > { %1285 = vmatpush3.bf16.msra.mxu1 %v1379_v31 }
  0x27   : > { %690 = vmatmul.mubr.bf16.vlgmr.msra.gmra.mrb[0].mxu0 %v1380_v32 }
  0x28   : > { %795 = vmatmul.mubr.bf16.vlgmr.msra.gmra.mrb[0].mxu1 %v1383_v34  ;;  %697 = vmatprep.mubr.bf16.mxu0 %v1386_v36 }
  0x29   : > { %802 = vmatprep.mubr.bf16.mxu1 %v1388_v37 }
  0x2f   : > { %698 = vmatmul.mubr.bf16.gmra.mrb[4].mxu0 %v1390_v38 }
  0x30   : > { %803 = vmatmul.mubr.bf16.gmra.mrb[4].mxu1 %v1391_v39  ;;  %705 = vmatprep.mubr.bf16.mxu0 %v1392_v40 }
  0x31   : > { %810 = vmatprep.mubr.bf16.mxu1 %v1394_v41 }
  0x37   : > { %706 = vmatmul.mubr.bf16.gmra.mrb[8].mxu0 %v1396_v42 }
  0x38   : > { %811 = vmatmul.mubr.bf16.gmra.mrb[8].mxu1 %v1397_v43  ;;  %713 = vmatprep.mubr.bf16.mxu0 %v1398_v44 }
  0x39   : > { %818 = vmatprep.mubr.bf16.mxu1 %v1400_v45 }
  0x3f   : > { %714 = vmatmul.mubr.bf16.gmra.mrb[12].mxu0 %v1402_v46 }
  0x40   : > { %819 = vmatmul.mubr.bf16.gmra.mrb[12].mxu1 %v1403_v47  ;;  %721 = vmatprep.mubr.bf16.mxu0 %v1404_v48 }
  0x41   : > { %826 = vmatprep.mubr.bf16.mxu1 %v1406_v49 }
  0x47   : > { %722 = vmatmul.mubr.bf16.gmra.mrb[16].mxu0 %v1408_v50 }
  0x48   : > { %827 = vmatmul.mubr.bf16.gmra.mrb[16].mxu1 %v1409_v51  ;;  %729 = vmatprep.mubr.bf16.mxu0 %v1410_v52 }
  0x49   : > { %834 = vmatprep.mubr.bf16.mxu1 %v1412_v53 }
  0x4f   : > { %730 = vmatmul.mubr.bf16.gmra.mrb[20].mxu0 %v1414_v54 }
  0x50   : > { %835 = vmatmul.mubr.bf16.gmra.mrb[20].mxu1 %v1415_v55  ;;  %737 = vmatprep.mubr.bf16.mxu0 %v1416_v56 }
  0x51   : > { %842 = vmatprep.mubr.bf16.mxu1 %v1418_v57 }
  0x57   : > { %738 = vmatmul.mubr.bf16.gmra.mrb[24].mxu0 %v1420_v58 }
  0x58   : > { %843 = vmatmul.mubr.bf16.gmra.mrb[24].mxu1 %v1421_v59  ;;  %745 = vmatprep.mubr.bf16.mxu0 %v1422_v60 }
  0x59   : > { %850 = vmatprep.mubr.bf16.mxu1 %v1424_v61 }
  0x5f   : > { %746 = vmatmul.mubr.bf16.gmra.mrb[28].mxu0 %v1426_v62 }
  0x60   : > { %851 = vmatmul.mubr.bf16.gmra.mrb[28].mxu1 %v1427_v63  ;;  %753 = vmatprep.mubr.bf16.mxu0 %v1428_v0 }
  0x61   : > { %858 = vmatprep.mubr.bf16.mxu1 %v1430_v1 }
  0x67   : > { %754 = vmatmul.mubr.bf16.gmra.mrb[32].mxu0 %v1432_v2 }
  0x68   : > { %859 = vmatmul.mubr.bf16.gmra.mrb[32].mxu1 %v1433_v3 }
  0xfa   : > { %v1216_v4 = vpop.f32.mrb[0].mxu0 }
  0xfb   : > { %v1286_v5 = vpop.f32.mrb[0].mxu1  ;;  %v1217_v7 = vpop.f32.mrb[1].mxu0 }
  0xfc   : > { %v1218_v8 = vadd.f32 %v1217_v7, %v1216_v4  ;;  %v1287_v9 = vpop.f32.mrb[1].mxu1  ;;  %v1219_v10 = vpop.f32.mrb[2].mxu0 }
  0xfd   : > { %v1288_v11 = vadd.f32 %v1287_v9, %v1286_v5  ;;  %v1289_v12 = vpop.f32.mrb[2].mxu1  ;;  %v1220_v13 = vpop.f32.mrb[3].mxu0 }
  0xfe   : > { %v692_v14 = vadd.f32 %v1218_v8, %v1615_v6  ;;  %v1221_v15 = vadd.f32 %v1220_v13, %v1219_v10  ;;  %v1290_v16 = vpop.f32.mrb[3].mxu1 }
  0xff   : > { %v1291_v17 = vadd.f32 %v1290_v16, %v1289_v12 }
 0x100   : > { %v797_v18 = vadd.f32 %v1288_v11, %v692_v14  ;;  %v695_v19 = vadd.f32 %v1221_v15, %v1615_v6 }
 0x102   : > { %v800_v20 = vadd.f32 %v1291_v17, %v695_v19  ;;  %v1222_v21 = vpop.f32.mrb[4].mxu0  ;;  %v867_v24 = vmax.f32 %v797_v18, 0.0 }
 0x103   : > { %v1292_v22 = vpop.f32.mrb[4].mxu1  ;;  %v1223_v23 = vpop.f32.mrb[5].mxu0 }
 0x104   : > { %v868_v25 = vmax.f32 %v800_v20, 0.0  ;;  %v1224_v26 = vadd.f32 %v1223_v23, %v1222_v21  ;;  %v1293_v27 = vpop.f32.mrb[5].mxu1  ;;  %v1225_v28 = vpop.f32.mrb[6].mxu0 }
 0x105   : > { %v1294_v29 = vadd.f32 %v1293_v27, %v1292_v22  ;;  %v1295_v30 = vpop.f32.mrb[6].mxu1  ;;  %v1226_v31 = vpop.f32.mrb[7].mxu0 }
 0x106   : > { %v1150_v32 = vpack.c.bf16 %v868_v25, %v867_v24  ;;  %v700_v33 = vadd.f32 %v1224_v26, %v1615_v6  ;;  %v1227_v34 = vadd.f32 %v1226_v31, %v1225_v28  ;;  %v1296_v35 = vpop.f32.mrb[7].mxu1 }
 0x107   : > { %v1297_v36 = vadd.f32 %v1296_v35, %v1295_v30 }
 0x108   : > { %1151 = vst [vmem:[%s1623_s10] sm:$0xff] %v1150_v32   ;;  %v805_v37 = vadd.f32 %v1294_v29, %v700_v33  ;;  %v703_v38 = vadd.f32 %v1227_v34, %v1615_v6 }
 0x10a   : > { %v808_v39 = vadd.f32 %v1297_v36, %v703_v38  ;;  %v1228_v40 = vpop.f32.mrb[8].mxu0  ;;  %v869_v43 = vmax.f32 %v805_v37, 0.0 }
 0x10b   : > { %v1298_v41 = vpop.f32.mrb[8].mxu1  ;;  %v1229_v42 = vpop.f32.mrb[9].mxu0 }
 0x10c   : > { %v870_v44 = vmax.f32 %v808_v39, 0.0  ;;  %v1230_v45 = vadd.f32 %v1229_v42, %v1228_v40  ;;  %v1299_v46 = vpop.f32.mrb[9].mxu1  ;;  %v1231_v47 = vpop.f32.mrb[10].mxu0 }
 0x10d   : > { %v1300_v48 = vadd.f32 %v1299_v46, %v1298_v41  ;;  %v1301_v49 = vpop.f32.mrb[10].mxu1  ;;  %v1232_v50 = vpop.f32.mrb[11].mxu0 }
 0x10e   : > { %v1155_v51 = vpack.c.bf16 %v870_v44, %v869_v43  ;;  %v708_v52 = vadd.f32 %v1230_v45, %v1615_v6  ;;  %v1233_v53 = vadd.f32 %v1232_v50, %v1231_v47  ;;  %v1302_v54 = vpop.f32.mrb[11].mxu1 }
 0x10f   : > { %v1303_v55 = vadd.f32 %v1302_v54, %v1301_v49 }
 0x110   : > { %1192 = vst [vmem:[%s1623_s10 + $0x8] sm:$0xff] %v1155_v51   ;;  %v813_v56 = vadd.f32 %v1300_v48, %v708_v52  ;;  %v711_v57 = vadd.f32 %v1233_v53, %v1615_v6 }
 0x112   : > { %v816_v58 = vadd.f32 %v1303_v55, %v711_v57  ;;  %v1234_v59 = vpop.f32.mrb[12].mxu0  ;;  %v871_v62 = vmax.f32 %v813_v56, 0.0 }
 0x113   : > { %v1304_v60 = vpop.f32.mrb[12].mxu1  ;;  %v1235_v61 = vpop.f32.mrb[13].mxu0 }
 0x114   : > { %v872_v63 = vmax.f32 %v816_v58, 0.0  ;;  %v1236_v0 = vadd.f32 %v1235_v61, %v1234_v59  ;;  %v1305_v1 = vpop.f32.mrb[13].mxu1  ;;  %v1237_v2 = vpop.f32.mrb[14].mxu0 }
 0x115   : > { %v1306_v3 = vadd.f32 %v1305_v1, %v1304_v60  ;;  %v1307_v4 = vpop.f32.mrb[14].mxu1  ;;  %v1238_v5 = vpop.f32.mrb[15].mxu0 }
 0x116   : > { %v1160_v7 = vpack.c.bf16 %v872_v63, %v871_v62  ;;  %v716_v8 = vadd.f32 %v1236_v0, %v1615_v6  ;;  %v1239_v9 = vadd.f32 %v1238_v5, %v1237_v2  ;;  %v1308_v10 = vpop.f32.mrb[15].mxu1 }
 0x117   : > { %v1309_v11 = vadd.f32 %v1308_v10, %v1307_v4 }
 0x118   : > { %1193 = vst [vmem:[%s1623_s10 + $0x10] sm:$0xff] %v1160_v7   ;;  %v821_v12 = vadd.f32 %v1306_v3, %v716_v8  ;;  %v719_v13 = vadd.f32 %v1239_v9, %v1615_v6 }
 0x11a   : > { %v824_v14 = vadd.f32 %v1309_v11, %v719_v13  ;;  %v1240_v15 = vpop.f32.mrb[16].mxu0  ;;  %v873_v18 = vmax.f32 %v821_v12, 0.0 }
 0x11b   : > { %v1310_v16 = vpop.f32.mrb[16].mxu1  ;;  %v1241_v17 = vpop.f32.mrb[17].mxu0 }
 0x11c   : > { %v874_v19 = vmax.f32 %v824_v14, 0.0  ;;  %v1242_v20 = vadd.f32 %v1241_v17, %v1240_v15  ;;  %v1311_v21 = vpop.f32.mrb[17].mxu1  ;;  %v1243_v22 = vpop.f32.mrb[18].mxu0 }
 0x11d   : > { %v1312_v23 = vadd.f32 %v1311_v21, %v1310_v16  ;;  %v1313_v24 = vpop.f32.mrb[18].mxu1  ;;  %v1244_v25 = vpop.f32.mrb[19].mxu0 }
 0x11e   : > { %v1165_v26 = vpack.c.bf16 %v874_v19, %v873_v18  ;;  %v724_v27 = vadd.f32 %v1242_v20, %v1615_v6  ;;  %v1245_v28 = vadd.f32 %v1244_v25, %v1243_v22  ;;  %v1314_v29 = vpop.f32.mrb[19].mxu1 }
 0x11f   : > { %v1315_v30 = vadd.f32 %v1314_v29, %v1313_v24 }
 0x120   : > { %1194 = vst [vmem:[%s1623_s10 + $0x18] sm:$0xff] %v1165_v26   ;;  %v829_v31 = vadd.f32 %v1312_v23, %v724_v27  ;;  %v727_v32 = vadd.f32 %v1245_v28, %v1615_v6 }
 0x122   : > { %v832_v33 = vadd.f32 %v1315_v30, %v727_v32  ;;  %v1246_v34 = vpop.f32.mrb[20].mxu0  ;;  %v875_v37 = vmax.f32 %v829_v31, 0.0 }
 0x123   : > { %v1316_v35 = vpop.f32.mrb[20].mxu1  ;;  %v1247_v36 = vpop.f32.mrb[21].mxu0 }
 0x124   : > { %v876_v38 = vmax.f32 %v832_v33, 0.0  ;;  %v1248_v39 = vadd.f32 %v1247_v36, %v1246_v34  ;;  %v1317_v40 = vpop.f32.mrb[21].mxu1  ;;  %v1249_v41 = vpop.f32.mrb[22].mxu0 }
 0x125   : > { %v1318_v42 = vadd.f32 %v1317_v40, %v1316_v35  ;;  %v1319_v43 = vpop.f32.mrb[22].mxu1  ;;  %v1250_v44 = vpop.f32.mrb[23].mxu0 }
 0x126   : > { %v1170_v45 = vpack.c.bf16 %v876_v38, %v875_v37  ;;  %v732_v46 = vadd.f32 %v1248_v39, %v1615_v6  ;;  %v1251_v47 = vadd.f32 %v1250_v44, %v1249_v41  ;;  %v1320_v48 = vpop.f32.mrb[23].mxu1 }
 0x127   : > { %v1321_v49 = vadd.f32 %v1320_v48, %v1319_v43 }
 0x128   : > { %1195 = vst [vmem:[%s1623_s10 + $0x20] sm:$0xff] %v1170_v45   ;;  %v837_v50 = vadd.f32 %v1318_v42, %v732_v46  ;;  %v735_v51 = vadd.f32 %v1251_v47, %v1615_v6 }
 0x12a   : > { %v840_v52 = vadd.f32 %v1321_v49, %v735_v51  ;;  %v1252_v53 = vpop.f32.mrb[24].mxu0  ;;  %v877_v56 = vmax.f32 %v837_v50, 0.0 }
 0x12b   : > { %v1322_v54 = vpop.f32.mrb[24].mxu1  ;;  %v1253_v55 = vpop.f32.mrb[25].mxu0 }
 0x12c   : > { %v878_v57 = vmax.f32 %v840_v52, 0.0  ;;  %v1254_v58 = vadd.f32 %v1253_v55, %v1252_v53  ;;  %v1323_v59 = vpop.f32.mrb[25].mxu1  ;;  %v1255_v60 = vpop.f32.mrb[26].mxu0 }
 0x12d   : > { %v1324_v61 = vadd.f32 %v1323_v59, %v1322_v54  ;;  %v1325_v62 = vpop.f32.mrb[26].mxu1  ;;  %v1256_v63 = vpop.f32.mrb[27].mxu0 }
 0x12e   : > { %v1175_v0 = vpack.c.bf16 %v878_v57, %v877_v56  ;;  %v740_v1 = vadd.f32 %v1254_v58, %v1615_v6  ;;  %v1257_v2 = vadd.f32 %v1256_v63, %v1255_v60  ;;  %v1326_v3 = vpop.f32.mrb[27].mxu1 }
 0x12f   : > { %v1327_v4 = vadd.f32 %v1326_v3, %v1325_v62 }
 0x130   : > { %1196 = vst [vmem:[%s1623_s10 + $0x28] sm:$0xff] %v1175_v0   ;;  %v845_v5 = vadd.f32 %v1324_v61, %v740_v1  ;;  %v743_v7 = vadd.f32 %v1257_v2, %v1615_v6 }
 0x132   : > { %v848_v8 = vadd.f32 %v1327_v4, %v743_v7  ;;  %v1258_v9 = vpop.f32.mrb[28].mxu0  ;;  %v879_v12 = vmax.f32 %v845_v5, 0.0 }
 0x133   : > { %v1328_v10 = vpop.f32.mrb[28].mxu1  ;;  %v1259_v11 = vpop.f32.mrb[29].mxu0 }
 0x134   : > { %v880_v13 = vmax.f32 %v848_v8, 0.0  ;;  %v1260_v14 = vadd.f32 %v1259_v11, %v1258_v9  ;;  %v1329_v15 = vpop.f32.mrb[29].mxu1  ;;  %v1261_v16 = vpop.f32.mrb[30].mxu0 }
 0x135   : > { %v1330_v17 = vadd.f32 %v1329_v15, %v1328_v10  ;;  %v1331_v18 = vpop.f32.mrb[30].mxu1  ;;  %v1262_v19 = vpop.f32.mrb[31].mxu0 }
 0x136   : > { %v1180_v20 = vpack.c.bf16 %v880_v13, %v879_v12  ;;  %v748_v21 = vadd.f32 %v1260_v14, %v1615_v6  ;;  %v1263_v22 = vadd.f32 %v1262_v19, %v1261_v16  ;;  %v1332_v23 = vpop.f32.mrb[31].mxu1 }
 0x137   : > { %v1333_v24 = vadd.f32 %v1332_v23, %v1331_v18 }
 0x138   : > { %1197 = vst [vmem:[%s1623_s10 + $0x30] sm:$0xff] %v1180_v20   ;;  %v853_v25 = vadd.f32 %v1330_v17, %v748_v21  ;;  %v751_v26 = vadd.f32 %v1263_v22, %v1615_v6 }
 0x13a   : > { %v856_v27 = vadd.f32 %v1333_v24, %v751_v26  ;;  %v1264_v28 = vpop.f32.mrb[32].mxu0  ;;  %v881_v31 = vmax.f32 %v853_v25, 0.0 }
 0x13b   : > { %v1334_v29 = vpop.f32.mrb[32].mxu1  ;;  %v1265_v30 = vpop.f32.mrb[33].mxu0 }
 0x13c   : > { %v882_v32 = vmax.f32 %v856_v27, 0.0  ;;  %v1266_v33 = vadd.f32 %v1265_v30, %v1264_v28  ;;  %v1335_v34 = vpop.f32.mrb[33].mxu1  ;;  %v1267_v35 = vpop.f32.mrb[34].mxu0 }
 0x13d   : > { %v1336_v36 = vadd.f32 %v1335_v34, %v1334_v29  ;;  %v1337_v37 = vpop.f32.mrb[34].mxu1  ;;  %v1268_v38 = vpop.f32.mrb[35].mxu0 }
 0x13e   : > { %v1185_v39 = vpack.c.bf16 %v882_v32, %v881_v31  ;;  %v756_v40 = vadd.f32 %v1266_v33, %v1615_v6  ;;  %v1269_v41 = vadd.f32 %v1268_v38, %v1267_v35  ;;  %v1338_v42 = vpop.f32.mrb[35].mxu1 }
 0x13f   : > { %v1339_v43 = vadd.f32 %v1338_v42, %v1337_v37 }
 0x140   : > { %1198 = vst [vmem:[%s1623_s10 + $0x38] sm:$0xff] %v1185_v39   ;;  %v861_v44 = vadd.f32 %v1336_v36, %v756_v40  ;;  %v759_v45 = vadd.f32 %v1269_v41, %v1615_v6 }
 0x142   : > { %v864_v46 = vadd.f32 %v1339_v43, %v759_v45  ;;  %v883_v47 = vmax.f32 %v861_v44, 0.0 }
 0x144   : > { %v884_v48 = vmax.f32 %v864_v46, 0.0 }
 0x146   : > { %v1190_v49 = vpack.c.bf16 %v884_v48, %v883_v47 }
 0x148   : > { %1199 = vst [vmem:[%s1623_s10 + $0x40] sm:$0xff] %v1190_v49  }
 0x149 PF: > { %s13_s12 = sadd.s32 1, %s1440_s12  }
 0x14a   : > { %p10_p4 = scmp.ge.s32.totalorder %s13_s12, 4  }
 0x14c   :  { %12 = sbr.rel (!%p10_p4) target bundleno = 1 (0x1), region = 62 }

// kernel: _lambda_.5
= control target key start
LH: loop header
LB: loop body
LE: loop exit
PB: predicated region body
PF: predicated region fallthrough
CT: control target
= control target key end

     0   :  { %v619_v28 = vlaneseq  ;;  %v4498_v36 = vmov 1966171168   ;;  %s5504_s0 = inlined_call_operand.vmem [shape: bf16[2,4608], index: 0, kind: input, shape index: {}]   ;;  %s5505_s1 = inlined_call_operand.vmem [shape: bf16[4608,128], index: 1, kind: input, shape index: {}]   ;;  %s5506_s2 = inlined_call_operand.vmem [shape: f32[1,128], index: 2, kind: input, shape index: {}]   ;;  %s5507_s3 = inlined_call_operand.vmem [shape: bf16[128,128], index: 3, kind: input, shape index: {}]   ;;  %s5508_s4 = inlined_call_operand.vmem [shape: f32[1,128], index: 4, kind: input, shape index: {}]   ;;  %s5509_s5 = inlined_call_operand.hbm [shape: f32[2,128], index: 5, kind: output, shape index: {}]  }
   0x1   :  { %v4174_v0 = vld [vmem:[%s5505_s1 + $0x40] sm:$0xff]   ;;  %v4178_v4 = vld [vmem:[%s5505_s1 + $0x48] sm:$0xff]   ;;  %v4182_v8 = vld [vmem:[%s5505_s1 + $0x50] sm:$0xff]   ;;  %v617_v37 = vunpack.c.l.s4 %v4498_v36 }
   0x2   :  { %v4175_v1 = vld [vmem:[%s5505_s1 + $0xc0] sm:$0xff]   ;;  %3745 = vmatprep.subr.bf16.mxu0 %v4174_v0  ;;  %v4179_v5 = vld [vmem:[%s5505_s1 + $0xc8] sm:$0xff]   ;;  %v4183_v9 = vld [vmem:[%s5505_s1 + $0xd0] sm:$0xff]   ;;  %v620_v33 = vshrl.u32 %v619_v28, 7 }
   0x3   :  { %v4176_v2 = vld [vmem:[%s5505_s1] sm:$0xff]   ;;  %3767 = vmatprep.subr.bf16.mxu1 %v4175_v1  ;;  %v4180_v6 = vld [vmem:[%s5505_s1 + $0x8] sm:$0xff]   ;;  %v4184_v10 = vld [vmem:[%s5505_s1 + $0x10] sm:$0xff]   ;;  %v618_v40 = vunpack.c.0.s8 %v617_v37 }
   0x4   :  { %v4177_v3 = vld [vmem:[%s5505_s1 + $0x80] sm:$0xff]   ;;  %3746 = vmatpush3.bf16.msra.mxu0 %v4176_v2  ;;  %v4181_v7 = vld [vmem:[%s5505_s1 + $0x88] sm:$0xff]   ;;  %v4185_v11 = vld [vmem:[%s5505_s1 + $0x90] sm:$0xff]  }
   0x5   :  { %3768 = vmatpush3.bf16.msra.mxu1 %v4177_v3  ;;  %3747 = vmatprep.subr.bf16.mxu0 %v4178_v4  ;;  %v4186_v12 = vld [vmem:[%s5505_s1 + $0x58] sm:$0xff]   ;;  %v4190_v16 = vld [vmem:[%s5505_s1 + $0x60] sm:$0xff]   ;;  %v4194_v20 = vld [vmem:[%s5505_s1 + $0x68] sm:$0xff]   ;;  %v4637_v41 = vsub.s32 %v618_v40, %v620_v33 }
   0x6   :  { %3769 = vmatprep.subr.bf16.mxu1 %v4179_v5  ;;  %v4187_v13 = vld [vmem:[%s5505_s1 + $0xd8] sm:$0xff]   ;;  %v4191_v17 = vld [vmem:[%s5505_s1 + $0xe0] sm:$0xff]   ;;  %v4195_v21 = vld [vmem:[%s5505_s1 + $0xe8] sm:$0xff]  }
   0x7   :  { %v4188_v14 = vld [vmem:[%s5505_s1 + $0x18] sm:$0xff]   ;;  %v4192_v18 = vld [vmem:[%s5505_s1 + $0x20] sm:$0xff]   ;;  %v4196_v22 = vld [vmem:[%s5505_s1 + $0x28] sm:$0xff]  }
   0x8   :  { %3748 = vmatpush3.bf16.msra.mxu0 %v4180_v6  ;;  %v4189_v15 = vld [vmem:[%s5505_s1 + $0x98] sm:$0xff]   ;;  %v4193_v19 = vld [vmem:[%s5505_s1 + $0xa0] sm:$0xff]   ;;  %v4197_v23 = vld [vmem:[%s5505_s1 + $0xa8] sm:$0xff]  }
   0x9   :  { %3770 = vmatpush3.bf16.msra.mxu1 %v4181_v7  ;;  %3749 = vmatprep.subr.bf16.mxu0 %v4182_v8  ;;  %v4198_v24 = vld [vmem:[%s5505_s1 + $0x70] sm:$0xff]   ;;  %v4202_v29 = vld [vmem:[%s5505_s1 + $0x78] sm:$0xff]   ;;  %v22_v34 = vld [vmem:[%s5504_s0] sm:$0xff] }
   0xa   :  { %3771 = vmatprep.subr.bf16.mxu1 %v4183_v9  ;;  %v4199_v25 = vld [vmem:[%s5505_s1 + $0xf0] sm:$0xff]   ;;  %v4203_v30 = vld [vmem:[%s5505_s1 + $0xf8] sm:$0xff]   ;;  %v4207_v35 = vld [vmem:[%s5505_s1 + $0x140] sm:$0xff]   ;;  %v615_v39 = vcombine.high %v22_v34, %v22_v34  ;;  %v622_v42 = vrot.slane %v22_v34, %v4637_v41 }
   0xb   :  { %v4200_v26 = vld [vmem:[%s5505_s1 + $0x30] sm:$0xff]   ;;  %v4204_v31 = vld [vmem:[%s5505_s1 + $0x38] sm:$0xff]   ;;  %v4208_v38 = vld [vmem:[%s5505_s1 + $0x1c0] sm:$0xff]  }
   0xc   :  { %3750 = vmatpush3.bf16.msra.mxu0 %v4184_v10  ;;  %v4201_v27 = vld [vmem:[%s5505_s1 + $0xb0] sm:$0xff]   ;;  %v4205_v32 = vld [vmem:[%s5505_s1 + $0xb8] sm:$0xff]   ;;  %v4641_v43 = vrot.slane %v615_v39, %v4637_v41  ;;  %v630_v44 = vcombine.high %v622_v42, %v622_v42  ;;  %v638_v45 = vrot.slane %v622_v42, %v4637_v41  ;;  %v4209_v47 = vld [vmem:[%s5505_s1 + $0x100] sm:$0xff]  }
   0xd   :  { %3772 = vmatpush3.bf16.msra.mxu1 %v4185_v11  ;;  %3751 = vmatprep.subr.bf16.mxu0 %v4186_v12  ;;  %v4210_v49 = vld [vmem:[%s5505_s1 + $0x180] sm:$0xff]   ;;  %v4211_v52 = vld [vmem:[%s5505_s1 + $0x148] sm:$0xff]   ;;  %v4215_v58 = vld [vmem:[%s5505_s1 + $0x150] sm:$0xff]  }
   0xe   :  { %3773 = vmatprep.subr.bf16.mxu1 %v4187_v13  ;;  %v631_v46 = vcombine.high %v4641_v43, %v4641_v43  ;;  %v652_v48 = vrot.slane %v630_v44, %v4637_v41  ;;  %v660_v51 = vcombine.high %v638_v45, %v638_v45  ;;  %v4212_v54 = vld [vmem:[%s5505_s1 + $0x1c8] sm:$0xff]   ;;  %v4216_v59 = vld [vmem:[%s5505_s1 + $0x1d0] sm:$0xff]   ;;  %v4219_v62 = vld [vmem:[%s5505_s1 + $0x158] sm:$0xff]  }
   0xf   :  { %v4213_v55 = vld [vmem:[%s5505_s1 + $0x108] sm:$0xff]   ;;  %v4217_v60 = vld [vmem:[%s5505_s1 + $0x110] sm:$0xff]   ;;  %v4220_v63 = vld [vmem:[%s5505_s1 + $0x1d8] sm:$0xff]  }
  0x10   :  { %3752 = vmatpush3.bf16.msra.mxu0 %v4188_v14  ;;  %v659_v50 = vrot.slane %v631_v46, %v4637_v41  ;;  %2631 = vmatprep.mubr.bf16.mxu0 %v652_v48  ;;  %v662_v53 = vcombine.high %v652_v48, %v652_v48  ;;  %v4214_v57 = vld [vmem:[%s5505_s1 + $0x188] sm:$0xff]   ;;  %v4218_v61 = vld [vmem:[%s5505_s1 + $0x190] sm:$0xff]   ;;  %v4221_v0 = vld [vmem:[%s5505_s1 + $0x118] sm:$0xff]  }
  0x11   :  { %3774 = vmatpush3.bf16.msra.mxu1 %v4189_v15  ;;  %3753 = vmatprep.subr.bf16.mxu0 %v4190_v16  ;;  %v4222_v1 = vld [vmem:[%s5505_s1 + $0x198] sm:$0xff]   ;;  %v4223_v2 = vld [vmem:[%s5505_s1 + $0x160] sm:$0xff]   ;;  %v4227_v6 = vld [vmem:[%s5505_s1 + $0x168] sm:$0xff]  }
  0x12   :  { %3775 = vmatprep.subr.bf16.mxu1 %v4191_v17  ;;  %v663_v56 = vcombine.high %v659_v50, %v659_v50  ;;  %2671 = vmatprep.mubr.bf16.mxu1 %v662_v53  ;;  %v4224_v3 = vld [vmem:[%s5505_s1 + $0x1e0] sm:$0xff]   ;;  %v4228_v7 = vld [vmem:[%s5505_s1 + $0x1e8] sm:$0xff]   ;;  %v4231_v10 = vld [vmem:[%s5505_s1 + $0x170] sm:$0xff]  }
  0x13   :  { %v4225_v4 = vld [vmem:[%s5505_s1 + $0x120] sm:$0xff]   ;;  %v4229_v8 = vld [vmem:[%s5505_s1 + $0x128] sm:$0xff]   ;;  %v4232_v11 = vld [vmem:[%s5505_s1 + $0x1f0] sm:$0xff]  }
  0x14   :  { %3754 = vmatpush3.bf16.msra.mxu0 %v4192_v18  ;;  %v4226_v5 = vld [vmem:[%s5505_s1 + $0x1a0] sm:$0xff]   ;;  %v4230_v9 = vld [vmem:[%s5505_s1 + $0x1a8] sm:$0xff]   ;;  %v4233_v12 = vld [vmem:[%s5505_s1 + $0x130] sm:$0xff]   ;;  %v645_v18 = vrot.slane %v4641_v43, %v4637_v41 }
  0x15   :  { %3776 = vmatpush3.bf16.msra.mxu1 %v4193_v19  ;;  %3755 = vmatprep.subr.bf16.mxu0 %v4194_v20  ;;  %v4234_v13 = vld [vmem:[%s5505_s1 + $0x1b0] sm:$0xff]   ;;  %v4235_v14 = vld [vmem:[%s5505_s1 + $0x178] sm:$0xff]   ;;  %v4239_v19 = vld [vmem:[%s5505_s1 + $0x240] sm:$0xff]  }
  0x16   :  { %3777 = vmatprep.subr.bf16.mxu1 %v4195_v21  ;;  %v4236_v15 = vld [vmem:[%s5505_s1 + $0x1f8] sm:$0xff]   ;;  %v4240_v20 = vld [vmem:[%s5505_s1 + $0x2c0] sm:$0xff]   ;;  %v4247_v28 = vld [vmem:[%s5505_s1 + $0x250] sm:$0xff]  }
  0x17   :  { %v4237_v16 = vld [vmem:[%s5505_s1 + $0x138] sm:$0xff]   ;;  %v4241_v21 = vld [vmem:[%s5505_s1 + $0x200] sm:$0xff]   ;;  %v4259_v40 = vld [vmem:[%s5505_s1 + $0x268] sm:$0xff]  }
  0x18   :  { %3756 = vmatpush3.bf16.msra.mxu0 %v4196_v22  ;;  %v4238_v17 = vld [vmem:[%s5505_s1 + $0x1b8] sm:$0xff]   ;;  %v4242_v22 = vld [vmem:[%s5505_s1 + $0x280] sm:$0xff]   ;;  %v4260_v42 = vld [vmem:[%s5505_s1 + $0x2e8] sm:$0xff]  }
  0x19   :  { %3778 = vmatpush3.bf16.msra.mxu1 %v4197_v23  ;;  %3757 = vmatprep.subr.bf16.mxu0 %v4198_v24  ;;  %v661_v23 = vcombine.high %v645_v18, %v645_v18  ;;  %v4243_v24 = vld [vmem:[%s5505_s1 + $0x248] sm:$0xff]   ;;  %v4252_v33 = vld [vmem:[%s5505_s1 + $0x2d8] sm:$0xff]   ;;  %v4255_v36 = vld [vmem:[%s5505_s1 + $0x260] sm:$0xff]  }
  0x1a   :  { %3779 = vmatprep.subr.bf16.mxu1 %v4199_v25  ;;  %v4244_v25 = vld [vmem:[%s5505_s1 + $0x2c8] sm:$0xff]   ;;  %v4253_v34 = vld [vmem:[%s5505_s1 + $0x218] sm:$0xff]   ;;  %v4256_v37 = vld [vmem:[%s5505_s1 + $0x2e0] sm:$0xff]  }
  0x1b   :  { %v4258_v39 = vld [vmem:[%s5505_s1 + $0x2a0] sm:$0xff]   ;;  %v4261_v43 = vld [vmem:[%s5505_s1 + $0x228] sm:$0xff]  }
  0x1c   :  { %3758 = vmatpush3.bf16.msra.mxu0 %v4200_v26  ;;  %v4245_v26 = vld [vmem:[%s5505_s1 + $0x208] sm:$0xff]  }
  0x1d   :  { %3780 = vmatpush3.bf16.msra.mxu1 %v4201_v27  ;;  %3759 = vmatprep.subr.bf16.mxu0 %v4202_v29  ;;  %v4246_v27 = vld [vmem:[%s5505_s1 + $0x288] sm:$0xff]   ;;  %v4248_v29 = vld [vmem:[%s5505_s1 + $0x2d0] sm:$0xff]  }
  0x1e   :  { %3781 = vmatprep.subr.bf16.mxu1 %v4203_v30  ;;  %v4249_v30 = vld [vmem:[%s5505_s1 + $0x210] sm:$0xff]   ;;  %v4262_v44 = vld [vmem:[%s5505_s1 + $0x2a8] sm:$0xff]  }
  0x1f   :  { %v23_v46 = vld [vmem:[%s5504_s0 + $0x8] sm:$0xff] }
  0x20   :  { %3760 = vmatpush3.bf16.msra.mxu0 %v4204_v31  ;;  %v4250_v31 = vld [vmem:[%s5505_s1 + $0x290] sm:$0xff]   ;;  %v671_v48 = vrot.slane %v23_v46, %v4637_v41 }
  0x21   :  { %3782 = vmatpush3.bf16.msra.mxu1 %v4205_v32  ;;  %3789 = vmatprep.subr.bf16.mxu0 %v4207_v35  ;;  %v4251_v32 = vld [vmem:[%s5505_s1 + $0x258] sm:$0xff]  }
  0x22   :  { %3811 = vmatprep.subr.bf16.mxu1 %v4208_v38  ;;  %v4254_v35 = vld [vmem:[%s5505_s1 + $0x298] sm:$0xff]   ;;  %v4257_v38 = vld [vmem:[%s5505_s1 + $0x220] sm:$0xff]  }
  0x23   :  { %2632 = vmatmul.mubr.bf16.vlgmr.msra.gmra.mrb[0].mxu0 %v638_v45  ;;  %v4263_v45 = vld [vmem:[%s5505_s1 + $0x270] sm:$0xff]  }
  0x24   :  { %3790 = vmatpush3.bf16.msra.mxu0 %v4209_v47  ;;  %2672 = vmatmul.mubr.bf16.vlgmr.msra.gmra.mrb[0].mxu1 %v660_v51  ;;  %v4264_v47 = vld [vmem:[%s5505_s1 + $0x2f0] sm:$0xff]  }
  0x25   :  { %3791 = vmatprep.subr.bf16.mxu0 %v4211_v52  ;;  %3812 = vmatpush3.bf16.msra.mxu1 %v4210_v49  ;;  %v664_v49 = vcombine.high %v23_v46, %v23_v46  ;;  %v4266_v51 = vld [vmem:[%s5505_s1 + $0x2b0] sm:$0xff]   ;;  %v679_v52 = vcombine.high %v671_v48, %v671_v48 }
  0x26   :  { %2711 = vmatprep.mubr.bf16.mxu0 %v659_v50  ;;  %3813 = vmatprep.subr.bf16.mxu1 %v4212_v54  ;;  %v4265_v50 = vld [vmem:[%s5505_s1 + $0x230] sm:$0xff]   ;;  %v4267_v54 = vld [vmem:[%s5505_s1 + $0x278] sm:$0xff]  }
  0x27   :  { %2751 = vmatprep.mubr.bf16.mxu1 %v663_v56  ;;  %v4829_v53 = vrot.slane %v664_v49, %v4637_v41  ;;  %v701_v56 = vrot.slane %v679_v52, %v4637_v41  ;;  %v4314_v46 = vld [vmem:[%s5505_s1 + $0x410] sm:$0xff]   ;;  %v4317_v49 = vld [vmem:[%s5505_s1 + $0x4d8] sm:$0xff]   ;;  %v4320_v52 = vld [vmem:[%s5505_s1 + $0x460] sm:$0xff]  }
  0x28   :  { %3792 = vmatpush3.bf16.msra.mxu0 %v4213_v55  ;;  %v4268_v55 = vld [vmem:[%s5505_s1 + $0x2f8] sm:$0xff]  }
  0x29   :  { %3793 = vmatprep.subr.bf16.mxu0 %v4215_v58  ;;  %3814 = vmatpush3.bf16.msra.mxu1 %v4214_v57  ;;  %v680_v57 = vcombine.high %v4829_v53, %v4829_v53  ;;  %v4269_v58 = vld [vmem:[%s5505_s1 + $0x238] sm:$0xff]  }
  0x2a   :  { %3815 = vmatprep.subr.bf16.mxu1 %v4216_v59  ;;  %v4270_v59 = vld [vmem:[%s5505_s1 + $0x2b8] sm:$0xff]  }
  0x2c   :  { %3794 = vmatpush3.bf16.msra.mxu0 %v4217_v60  ;;  %v711_v60 = vcombine.high %v701_v56, %v701_v56 }
  0x2d   :  { %3795 = vmatprep.subr.bf16.mxu0 %v4219_v62  ;;  %3816 = vmatpush3.bf16.msra.mxu1 %v4218_v61  ;;  %v687_v61 = vrot.slane %v671_v48, %v4637_v41  ;;  %v4271_v62 = vld [vmem:[%s5505_s1 + $0x340] sm:$0xff]   ;;  %v4316_v48 = vld [vmem:[%s5505_s1 + $0x458] sm:$0xff]  }
  0x2e   :  { %3817 = vmatprep.subr.bf16.mxu1 %v4220_v63  ;;  %v4272_v63 = vld [vmem:[%s5505_s1 + $0x3c0] sm:$0xff]  }
  0x30   :  { %3796 = vmatpush3.bf16.msra.mxu0 %v4221_v0  ;;  %v708_v0 = vrot.slane %v680_v57, %v4637_v41  ;;  %v4325_v57 = vld [vmem:[%s5505_s1 + $0x4e8] sm:$0xff]  }
  0x31   :  { %3797 = vmatprep.subr.bf16.mxu0 %v4223_v2  ;;  %3818 = vmatpush3.bf16.msra.mxu1 %v4222_v1  ;;  %v4273_v1 = vld [vmem:[%s5505_s1 + $0x300] sm:$0xff]  }
  0x32   :  { %3819 = vmatprep.subr.bf16.mxu1 %v4224_v3  ;;  %v4274_v2 = vld [vmem:[%s5505_s1 + $0x380] sm:$0xff]   ;;  %v709_v3 = vcombine.high %v687_v61, %v687_v61 }
  0x34   :  { %3798 = vmatpush3.bf16.msra.mxu0 %v4225_v4  ;;  %v4275_v4 = vld [vmem:[%s5505_s1 + $0x348] sm:$0xff]  }
  0x35   :  { %3799 = vmatprep.subr.bf16.mxu0 %v4227_v6  ;;  %3820 = vmatpush3.bf16.msra.mxu1 %v4226_v5  ;;  %v4276_v5 = vld [vmem:[%s5505_s1 + $0x3c8] sm:$0xff]   ;;  %v712_v6 = vcombine.high %v708_v0, %v708_v0 }
  0x36   :  { %3821 = vmatprep.subr.bf16.mxu1 %v4228_v7  ;;  %v4277_v7 = vld [vmem:[%s5505_s1 + $0x308] sm:$0xff]  }
  0x38   :  { %3800 = vmatpush3.bf16.msra.mxu0 %v4229_v8  ;;  %v4278_v8 = vld [vmem:[%s5505_s1 + $0x388] sm:$0xff]  }
  0x39   :  { %3801 = vmatprep.subr.bf16.mxu0 %v4231_v10  ;;  %3822 = vmatpush3.bf16.msra.mxu1 %v4230_v9  ;;  %v4279_v9 = vld [vmem:[%s5505_s1 + $0x350] sm:$0xff]  }
  0x3a   :  { %3823 = vmatprep.subr.bf16.mxu1 %v4232_v11  ;;  %v4280_v10 = vld [vmem:[%s5505_s1 + $0x3d0] sm:$0xff]  }
  0x3b   :  { %v4281_v11 = vld [vmem:[%s5505_s1 + $0x310] sm:$0xff]  }
  0x3c   :  { %3802 = vmatpush3.bf16.msra.mxu0 %v4233_v12  ;;  %v4282_v12 = vld [vmem:[%s5505_s1 + $0x390] sm:$0xff]  }
  0x3d   :  { %3803 = vmatprep.subr.bf16.mxu0 %v4235_v14  ;;  %3824 = vmatpush3.bf16.msra.mxu1 %v4234_v13  ;;  %v4283_v13 = vld [vmem:[%s5505_s1 + $0x358] sm:$0xff]  }
  0x3e   :  { %3825 = vmatprep.subr.bf16.mxu1 %v4236_v15  ;;  %v4284_v14 = vld [vmem:[%s5505_s1 + $0x3d8] sm:$0xff]  }
  0x3f   :  { %v4285_v15 = vld [vmem:[%s5505_s1 + $0x318] sm:$0xff]  }
  0x40   :  { %3804 = vmatpush3.bf16.msra.mxu0 %v4237_v16  ;;  %v4286_v16 = vld [vmem:[%s5505_s1 + $0x398] sm:$0xff]  }
  0x41   :  { %3833 = vmatprep.subr.bf16.mxu0 %v4239_v19  ;;  %3826 = vmatpush3.bf16.msra.mxu1 %v4238_v17  ;;  %v4287_v17 = vld [vmem:[%s5505_s1 + $0x360] sm:$0xff]  }
  0x42   :  { %3855 = vmatprep.subr.bf16.mxu1 %v4240_v20  ;;  %v4289_v19 = vld [vmem:[%s5505_s1 + $0x320] sm:$0xff]  }
  0x43   :  { %2712 = vmatmul.mubr.bf16.vlgmr.msra.gmra.mrb[4].mxu0 %v645_v18  ;;  %v4288_v18 = vld [vmem:[%s5505_s1 + $0x3e0] sm:$0xff]  }
  0x44   :  { %3834 = vmatpush3.bf16.msra.mxu0 %v4241_v21  ;;  %2752 = vmatmul.mubr.bf16.vlgmr.msra.gmra.mrb[4].mxu1 %v661_v23  ;;  %v4290_v20 = vld [vmem:[%s5505_s1 + $0x3a0] sm:$0xff]   ;;  %v4291_v21 = vld [vmem:[%s5505_s1 + $0x368] sm:$0xff]  }
  0x45   :  { %3835 = vmatprep.subr.bf16.mxu0 %v4243_v24  ;;  %3856 = vmatpush3.bf16.msra.mxu1 %v4242_v22  ;;  %v4292_v22 = vld [vmem:[%s5505_s1 + $0x3e8] sm:$0xff]  }
  0x46   :  { %3857 = vmatprep.subr.bf16.mxu1 %v4244_v25  ;;  %2791 = vmatprep.mubr.bf16.mxu0 %v701_v56  ;;  %v4293_v23 = vld [vmem:[%s5505_s1 + $0x328] sm:$0xff]   ;;  %v4295_v25 = vld [vmem:[%s5505_s1 + $0x370] sm:$0xff]  }
  0x47   :  { %2831 = vmatprep.mubr.bf16.mxu1 %v711_v60  ;;  %v4294_v24 = vld [vmem:[%s5505_s1 + $0x3a8] sm:$0xff]   ;;  %v4328_v60 = vld [vmem:[%s5505_s1 + $0x470] sm:$0xff]  }
  0x48   :  { %3836 = vmatpush3.bf16.msra.mxu0 %v4245_v26  ;;  %v4296_v26 = vld [vmem:[%s5505_s1 + $0x3f0] sm:$0xff]   ;;  %v4324_v56 = vld [vmem:[%s5505_s1 + $0x468] sm:$0xff]  }
  0x49   :  { %3837 = vmatprep.subr.bf16.mxu0 %v4247_v28  ;;  %3858 = vmatpush3.bf16.msra.mxu1 %v4246_v27  ;;  %v4297_v27 = vld [vmem:[%s5505_s1 + $0x330] sm:$0xff]  }
  0x4a   :  { %3859 = vmatprep.subr.bf16.mxu1 %v4248_v29  ;;  %v4298_v28 = vld [vmem:[%s5505_s1 + $0x3b0] sm:$0xff]   ;;  %v4299_v29 = vld [vmem:[%s5505_s1 + $0x378] sm:$0xff]  }
  0x4c   :  { %3838 = vmatpush3.bf16.msra.mxu0 %v4249_v30  ;;  %v4300_v30 = vld [vmem:[%s5505_s1 + $0x3f8] sm:$0xff]  }
  0x4d   :  { %3839 = vmatprep.subr.bf16.mxu0 %v4251_v32  ;;  %3860 = vmatpush3.bf16.msra.mxu1 %v4250_v31  ;;  %v4301_v31 = vld [vmem:[%s5505_s1 + $0x338] sm:$0xff]  }
  0x4e   :  { %3861 = vmatprep.subr.bf16.mxu1 %v4252_v33  ;;  %v4302_v32 = vld [vmem:[%s5505_s1 + $0x3b8] sm:$0xff]   ;;  %v694_v33 = vrot.slane %v4829_v53, %v4637_v41  ;;  %v4321_v53 = vld [vmem:[%s5505_s1 + $0x4e0] sm:$0xff]  }
  0x50   :  { %3840 = vmatpush3.bf16.msra.mxu0 %v4253_v34  ;;  %v4304_v34 = vld [vmem:[%s5505_s1 + $0x440] sm:$0xff]  }
  0x51   :  { %3841 = vmatprep.subr.bf16.mxu0 %v4255_v36  ;;  %3862 = vmatpush3.bf16.msra.mxu1 %v4254_v35  ;;  %v4305_v35 = vld [vmem:[%s5505_s1 + $0x4c0] sm:$0xff]  }
  0x52   :  { %3863 = vmatprep.subr.bf16.mxu1 %v4256_v37  ;;  %v4306_v36 = vld [vmem:[%s5505_s1 + $0x400] sm:$0xff]  }
  0x53   :  { %v4307_v37 = vld [vmem:[%s5505_s1 + $0x480] sm:$0xff]  }
  0x54   :  { %3842 = vmatpush3.bf16.msra.mxu0 %v4257_v38  ;;  %v710_v38 = vcombine.high %v694_v33, %v694_v33 }
  0x55   :  { %3843 = vmatprep.subr.bf16.mxu0 %v4259_v40  ;;  %3864 = vmatpush3.bf16.msra.mxu1 %v4258_v39  ;;  %v4308_v39 = vld [vmem:[%s5505_s1 + $0x448] sm:$0xff]  }
  0x56   :  { %3865 = vmatprep.subr.bf16.mxu1 %v4260_v42  ;;  %v4309_v40 = vld [vmem:[%s5505_s1 + $0x4c8] sm:$0xff]  }
  0x57   :  { %v4310_v42 = vld [vmem:[%s5505_s1 + $0x408] sm:$0xff]  }
  0x58   :  { %3844 = vmatpush3.bf16.msra.mxu0 %v4261_v43  ;;  %v4311_v43 = vld [vmem:[%s5505_s1 + $0x488] sm:$0xff]  }
  0x59   :  { %3845 = vmatprep.subr.bf16.mxu0 %v4263_v45  ;;  %3866 = vmatpush3.bf16.msra.mxu1 %v4262_v44  ;;  %v4312_v44 = vld [vmem:[%s5505_s1 + $0x450] sm:$0xff]  }
  0x5a   :  { %3867 = vmatprep.subr.bf16.mxu1 %v4264_v47  ;;  %v4313_v45 = vld [vmem:[%s5505_s1 + $0x4d0] sm:$0xff]  }
  0x5b   :  { %v4315_v47 = vld [vmem:[%s5505_s1 + $0x490] sm:$0xff]  }
  0x5c   :  { %3846 = vmatpush3.bf16.msra.mxu0 %v4265_v50  ;;  %v4318_v50 = vld [vmem:[%s5505_s1 + $0x418] sm:$0xff]  }
  0x5d   :  { %3847 = vmatprep.subr.bf16.mxu0 %v4267_v54  ;;  %3868 = vmatpush3.bf16.msra.mxu1 %v4266_v51  ;;  %v4319_v51 = vld [vmem:[%s5505_s1 + $0x498] sm:$0xff]   ;;  %v4322_v54 = vld [vmem:[%s5505_s1 + $0x420] sm:$0xff]  }
  0x5e   :  { %3869 = vmatprep.subr.bf16.mxu1 %v4268_v55  ;;  %v4323_v55 = vld [vmem:[%s5505_s1 + $0x4a0] sm:$0xff]  }
  0x60   :  { %3848 = vmatpush3.bf16.msra.mxu0 %v4269_v58  ;;  %v4326_v58 = vld [vmem:[%s5505_s1 + $0x428] sm:$0xff]  }
  0x61   :  { %3877 = vmatprep.subr.bf16.mxu0 %v4271_v62  ;;  %3870 = vmatpush3.bf16.msra.mxu1 %v4270_v59  ;;  %v4327_v59 = vld [vmem:[%s5505_s1 + $0x4a8] sm:$0xff]   ;;  %v4329_v62 = vld [vmem:[%s5505_s1 + $0x4f0] sm:$0xff]  }
  0x62   :  { %3899 = vmatprep.subr.bf16.mxu1 %v4272_v63 }
  0x63   :  { %2792 = vmatmul.mubr.bf16.vlgmr.msra.gmra.mrb[8].mxu0 %v687_v61  ;;  %v24_v61 = vld [vmem:[%s5504_s0 + $0x10] sm:$0xff] }
  0x64   :  { %3878 = vmatpush3.bf16.msra.mxu0 %v4273_v1  ;;  %2871 = vmatprep.mubr.bf16.mxu0 %v708_v0  ;;  %v720_v63 = vrot.slane %v24_v61, %v4637_v41  ;;  %v713_v0 = vcombine.high %v24_v61, %v24_v61  ;;  %v4330_v1 = vld [vmem:[%s5505_s1 + $0x430] sm:$0xff]  }
  0x65   :  { %2832 = vmatmul.mubr.bf16.vlgmr.msra.gmra.mrb[8].mxu1 %v709_v3  ;;  %3879 = vmatprep.subr.bf16.mxu0 %v4275_v4  ;;  %v4379_v61 = vld [vmem:[%s5505_s1 + $0x610] sm:$0xff]  }
  0x66   :  { %3900 = vmatpush3.bf16.msra.mxu1 %v4274_v2  ;;  %2911 = vmatprep.mubr.bf16.mxu1 %v712_v6  ;;  %v4331_v2 = vld [vmem:[%s5505_s1 + $0x4b0] sm:$0xff]   ;;  %v728_v3 = vcombine.high %v720_v63, %v720_v63  ;;  %v5035_v4 = vrot.slane %v713_v0, %v4637_v41  ;;  %v4333_v6 = vld [vmem:[%s5505_s1 + $0x4f8] sm:$0xff]  }
  0x67   :  { %3901 = vmatprep.subr.bf16.mxu1 %v4276_v5  ;;  %v4332_v5 = vld [vmem:[%s5505_s1 + $0x478] sm:$0xff]  }
  0x68   :  { %3880 = vmatpush3.bf16.msra.mxu0 %v4277_v7  ;;  %v750_v7 = vrot.slane %v728_v3, %v4637_v41  ;;  %v4382_v0 = vld [vmem:[%s5505_s1 + $0x6d8] sm:$0xff]   ;;  %v4385_v3 = vld [vmem:[%s5505_s1 + $0x660] sm:$0xff]  }
  0x69   :  { %3881 = vmatprep.subr.bf16.mxu0 %v4279_v9  ;;  %v4334_v9 = vld [vmem:[%s5505_s1 + $0x438] sm:$0xff]  }
  0x6a   :  { %3902 = vmatpush3.bf16.msra.mxu1 %v4278_v8  ;;  %v729_v8 = vcombine.high %v5035_v4, %v5035_v4 }
  0x6b   :  { %3903 = vmatprep.subr.bf16.mxu1 %v4280_v10  ;;  %v4335_v10 = vld [vmem:[%s5505_s1 + $0x4b8] sm:$0xff]  }
  0x6c   :  { %3882 = vmatpush3.bf16.msra.mxu0 %v4281_v11  ;;  %v760_v11 = vcombine.high %v750_v7, %v750_v7 }
  0x6d   :  { %3883 = vmatprep.subr.bf16.mxu0 %v4283_v13  ;;  %v4336_v13 = vld [vmem:[%s5505_s1 + $0x540] sm:$0xff]  }
  0x6e   :  { %3904 = vmatpush3.bf16.msra.mxu1 %v4282_v12  ;;  %v736_v12 = vrot.slane %v720_v63, %v4637_v41  ;;  %v4381_v63 = vld [vmem:[%s5505_s1 + $0x658] sm:$0xff]  }
  0x6f   :  { %3905 = vmatprep.subr.bf16.mxu1 %v4284_v14  ;;  %v4337_v14 = vld [vmem:[%s5505_s1 + $0x5c0] sm:$0xff]  }
  0x70   :  { %3884 = vmatpush3.bf16.msra.mxu0 %v4285_v15  ;;  %v757_v15 = vrot.slane %v729_v8, %v4637_v41  ;;  %v4390_v8 = vld [vmem:[%s5505_s1 + $0x6e8] sm:$0xff]  }
  0x71   :  { %3885 = vmatprep.subr.bf16.mxu0 %v4287_v17  ;;  %v4339_v17 = vld [vmem:[%s5505_s1 + $0x580] sm:$0xff]  }
  0x72   :  { %3906 = vmatpush3.bf16.msra.mxu1 %v4286_v16  ;;  %v4338_v16 = vld [vmem:[%s5505_s1 + $0x500] sm:$0xff]  }
  0x73   :  { %3907 = vmatprep.subr.bf16.mxu1 %v4288_v18  ;;  %v758_v18 = vcombine.high %v736_v12, %v736_v12 }
  0x74   :  { %3886 = vmatpush3.bf16.msra.mxu0 %v4289_v19  ;;  %v4340_v19 = vld [vmem:[%s5505_s1 + $0x548] sm:$0xff]  }
  0x75   :  { %3887 = vmatprep.subr.bf16.mxu0 %v4291_v21  ;;  %v761_v21 = vcombine.high %v757_v15, %v757_v15 }
  0x76   :  { %3908 = vmatpush3.bf16.msra.mxu1 %v4290_v20  ;;  %v4341_v20 = vld [vmem:[%s5505_s1 + $0x5c8] sm:$0xff]  }
  0x77   :  { %3909 = vmatprep.subr.bf16.mxu1 %v4292_v22  ;;  %v4342_v22 = vld [vmem:[%s5505_s1 + $0x508] sm:$0xff]  }
  0x78   :  { %3888 = vmatpush3.bf16.msra.mxu0 %v4293_v23  ;;  %v4343_v23 = vld [vmem:[%s5505_s1 + $0x588] sm:$0xff]  }
  0x79   :  { %3889 = vmatprep.subr.bf16.mxu0 %v4295_v25  ;;  %v4345_v25 = vld [vmem:[%s5505_s1 + $0x5d0] sm:$0xff]  }
  0x7a   :  { %3910 = vmatpush3.bf16.msra.mxu1 %v4294_v24  ;;  %v4344_v24 = vld [vmem:[%s5505_s1 + $0x550] sm:$0xff]  }
  0x7b   :  { %3911 = vmatprep.subr.bf16.mxu1 %v4296_v26  ;;  %v4346_v26 = vld [vmem:[%s5505_s1 + $0x510] sm:$0xff]  }
  0x7c   :  { %3890 = vmatpush3.bf16.msra.mxu0 %v4297_v27  ;;  %v4347_v27 = vld [vmem:[%s5505_s1 + $0x590] sm:$0xff]  }
  0x7d   :  { %3891 = vmatprep.subr.bf16.mxu0 %v4299_v29  ;;  %v4349_v29 = vld [vmem:[%s5505_s1 + $0x5d8] sm:$0xff]  }
  0x7e   :  { %3912 = vmatpush3.bf16.msra.mxu1 %v4298_v28  ;;  %v4348_v28 = vld [vmem:[%s5505_s1 + $0x558] sm:$0xff]  }
  0x7f   :  { %3913 = vmatprep.subr.bf16.mxu1 %v4300_v30  ;;  %v4350_v30 = vld [vmem:[%s5505_s1 + $0x518] sm:$0xff]  }
  0x80   :  { %3892 = vmatpush3.bf16.msra.mxu0 %v4301_v31  ;;  %v4351_v31 = vld [vmem:[%s5505_s1 + $0x598] sm:$0xff]  }
  0x81   :  { %3921 = vmatprep.subr.bf16.mxu0 %v4304_v34  ;;  %v4354_v34 = vld [vmem:[%s5505_s1 + $0x520] sm:$0xff]  }
  0x82   :  { %3914 = vmatpush3.bf16.msra.mxu1 %v4302_v32  ;;  %v4352_v32 = vld [vmem:[%s5505_s1 + $0x560] sm:$0xff]  }
  0x83   :  { %2872 = vmatmul.mubr.bf16.vlgmr.msra.gmra.mrb[12].mxu0 %v694_v33  ;;  %3943 = vmatprep.subr.bf16.mxu1 %v4305_v35  ;;  %v4353_v33 = vld [vmem:[%s5505_s1 + $0x5e0] sm:$0xff]  }
  0x84   :  { %3922 = vmatpush3.bf16.msra.mxu0 %v4306_v36  ;;  %2951 = vmatprep.mubr.bf16.mxu0 %v750_v7  ;;  %v4355_v35 = vld [vmem:[%s5505_s1 + $0x5a0] sm:$0xff]   ;;  %v4356_v36 = vld [vmem:[%s5505_s1 + $0x568] sm:$0xff]  }
  0x85   :  { %2912 = vmatmul.mubr.bf16.vlgmr.msra.gmra.mrb[12].mxu1 %v710_v38  ;;  %3923 = vmatprep.subr.bf16.mxu0 %v4308_v39  ;;  %v4358_v38 = vld [vmem:[%s5505_s1 + $0x528] sm:$0xff]  }
  0x86   :  { %3944 = vmatpush3.bf16.msra.mxu1 %v4307_v37  ;;  %2991 = vmatprep.mubr.bf16.mxu1 %v760_v11  ;;  %v4357_v37 = vld [vmem:[%s5505_s1 + $0x5e8] sm:$0xff]   ;;  %v4393_v11 = vld [vmem:[%s5505_s1 + $0x670] sm:$0xff]  }
  0x87   :  { %3945 = vmatprep.subr.bf16.mxu1 %v4309_v40  ;;  %v4359_v39 = vld [vmem:[%s5505_s1 + $0x5a8] sm:$0xff]   ;;  %v4360_v40 = vld [vmem:[%s5505_s1 + $0x570] sm:$0xff]  }
  0x88   :  { %3924 = vmatpush3.bf16.msra.mxu0 %v4310_v42  ;;  %v4361_v42 = vld [vmem:[%s5505_s1 + $0x5f0] sm:$0xff]   ;;  %v4389_v7 = vld [vmem:[%s5505_s1 + $0x668] sm:$0xff]  }
  0x89   :  { %3925 = vmatprep.subr.bf16.mxu0 %v4312_v44  ;;  %v4363_v44 = vld [vmem:[%s5505_s1 + $0x5b0] sm:$0xff]  }
  0x8a   :  { %3946 = vmatpush3.bf16.msra.mxu1 %v4311_v43  ;;  %v4362_v43 = vld [vmem:[%s5505_s1 + $0x530] sm:$0xff]  }
  0x8b   :  { %3947 = vmatprep.subr.bf16.mxu1 %v4313_v45  ;;  %v4364_v45 = vld [vmem:[%s5505_s1 + $0x578] sm:$0xff]  }
  0x8c   :  { %3926 = vmatpush3.bf16.msra.mxu0 %v4314_v46  ;;  %v4365_v46 = vld [vmem:[%s5505_s1 + $0x5f8] sm:$0xff]  }
  0x8d   :  { %3927 = vmatprep.subr.bf16.mxu0 %v4316_v48  ;;  %v4367_v48 = vld [vmem:[%s5505_s1 + $0x5b8] sm:$0xff]  }
  0x8e   :  { %3948 = vmatpush3.bf16.msra.mxu1 %v4315_v47  ;;  %v4366_v47 = vld [vmem:[%s5505_s1 + $0x538] sm:$0xff]  }
  0x8f   :  { %3949 = vmatprep.subr.bf16.mxu1 %v4317_v49  ;;  %v743_v49 = vrot.slane %v5035_v4, %v4637_v41  ;;  %v4386_v4 = vld [vmem:[%s5505_s1 + $0x6e0] sm:$0xff]  }
  0x90   :  { %3928 = vmatpush3.bf16.msra.mxu0 %v4318_v50  ;;  %v4369_v50 = vld [vmem:[%s5505_s1 + $0x640] sm:$0xff]  }
  0x91   :  { %3929 = vmatprep.subr.bf16.mxu0 %v4320_v52  ;;  %v4371_v52 = vld [vmem:[%s5505_s1 + $0x600] sm:$0xff]  }
  0x92   :  { %3950 = vmatpush3.bf16.msra.mxu1 %v4319_v51  ;;  %v4370_v51 = vld [vmem:[%s5505_s1 + $0x6c0] sm:$0xff]  }
  0x93   :  { %3951 = vmatprep.subr.bf16.mxu1 %v4321_v53  ;;  %v4372_v53 = vld [vmem:[%s5505_s1 + $0x680] sm:$0xff]  }
  0x94   :  { %3930 = vmatpush3.bf16.msra.mxu0 %v4322_v54  ;;  %v759_v54 = vcombine.high %v743_v49, %v743_v49 }
  0x95   :  { %3931 = vmatprep.subr.bf16.mxu0 %v4324_v56  ;;  %v4374_v56 = vld [vmem:[%s5505_s1 + $0x6c8] sm:$0xff]  }
  0x96   :  { %3952 = vmatpush3.bf16.msra.mxu1 %v4323_v55  ;;  %v4373_v55 = vld [vmem:[%s5505_s1 + $0x648] sm:$0xff]  }
  0x97   :  { %3953 = vmatprep.subr.bf16.mxu1 %v4325_v57  ;;  %v4375_v57 = vld [vmem:[%s5505_s1 + $0x608] sm:$0xff]  }
  0x98   :  { %3932 = vmatpush3.bf16.msra.mxu0 %v4326_v58  ;;  %v4376_v58 = vld [vmem:[%s5505_s1 + $0x688] sm:$0xff]  }
  0x99   :  { %3933 = vmatprep.subr.bf16.mxu0 %v4328_v60  ;;  %v4378_v60 = vld [vmem:[%s5505_s1 + $0x6d0] sm:$0xff]  }
  0x9a   :  { %3954 = vmatpush3.bf16.msra.mxu1 %v4327_v59  ;;  %v4377_v59 = vld [vmem:[%s5505_s1 + $0x650] sm:$0xff]  }
  0x9b   :  { %3955 = vmatprep.subr.bf16.mxu1 %v4329_v62  ;;  %v4380_v62 = vld [vmem:[%s5505_s1 + $0x690] sm:$0xff]  }
  0x9c   :  { %3934 = vmatpush3.bf16.msra.mxu0 %v4330_v1  ;;  %v4383_v1 = vld [vmem:[%s5505_s1 + $0x618] sm:$0xff]  }
  0x9d   :  { %3935 = vmatprep.subr.bf16.mxu0 %v4332_v5  ;;  %v4387_v5 = vld [vmem:[%s5505_s1 + $0x620] sm:$0xff]  }
  0x9e   :  { %3956 = vmatpush3.bf16.msra.mxu1 %v4331_v2  ;;  %v4384_v2 = vld [vmem:[%s5505_s1 + $0x698] sm:$0xff]  }
  0x9f   :  { %3957 = vmatprep.subr.bf16.mxu1 %v4333_v6  ;;  %v4388_v6 = vld [vmem:[%s5505_s1 + $0x6a0] sm:$0xff]  }
  0xa0   :  { %3936 = vmatpush3.bf16.msra.mxu0 %v4334_v9  ;;  %v4391_v9 = vld [vmem:[%s5505_s1 + $0x628] sm:$0xff]  }
  0xa1   :  { %3965 = vmatprep.subr.bf16.mxu0 %v4336_v13  ;;  %v4394_v13 = vld [vmem:[%s5505_s1 + $0x6f0] sm:$0xff]  }
  0xa2   :  { %3958 = vmatpush3.bf16.msra.mxu1 %v4335_v10  ;;  %v4392_v10 = vld [vmem:[%s5505_s1 + $0x6a8] sm:$0xff]  }
  0xa3   :  { %2952 = vmatmul.mubr.bf16.vlgmr.msra.gmra.mrb[16].mxu0 %v736_v12  ;;  %3987 = vmatprep.subr.bf16.mxu1 %v4337_v14  ;;  %v25_v12 = vld [vmem:[%s5504_s0 + $0x18] sm:$0xff] }
  0xa4   :  { %3966 = vmatpush3.bf16.msra.mxu0 %v4338_v16  ;;  %3031 = vmatprep.mubr.bf16.mxu0 %v757_v15  ;;  %v769_v14 = vrot.slane %v25_v12, %v4637_v41  ;;  %v762_v15 = vcombine.high %v25_v12, %v25_v12  ;;  %v4395_v16 = vld [vmem:[%s5505_s1 + $0x630] sm:$0xff]   ;;  %v4432_v12 = vld [vmem:[%s5505_s1 + $0x7b8] sm:$0xff]  }
  0xa5   :  { %2992 = vmatmul.mubr.bf16.vlgmr.msra.gmra.mrb[16].mxu1 %v758_v18  ;;  %3967 = vmatprep.subr.bf16.mxu0 %v4340_v19 }
  0xa6   :  { %3988 = vmatpush3.bf16.msra.mxu1 %v4339_v17  ;;  %3071 = vmatprep.mubr.bf16.mxu1 %v761_v21  ;;  %v4397_v17 = vld [vmem:[%s5505_s1 + $0x678] sm:$0xff]   ;;  %v777_v18 = vcombine.high %v769_v14, %v769_v14  ;;  %v5241_v19 = vrot.slane %v762_v15, %v4637_v41  ;;  %v4435_v15 = vld [vmem:[%s5505_s1 + $0x8c0] sm:$0xff]  }
  0xa7   :  { %3989 = vmatprep.subr.bf16.mxu1 %v4341_v20  ;;  %v4396_v20 = vld [vmem:[%s5505_s1 + $0x6b0] sm:$0xff]   ;;  %v4398_v21 = vld [vmem:[%s5505_s1 + $0x6f8] sm:$0xff]  }
  0xa8   :  { %3968 = vmatpush3.bf16.msra.mxu0 %v4342_v22  ;;  %v799_v22 = vrot.slane %v777_v18, %v4637_v41 }
  0xa9   :  { %3969 = vmatprep.subr.bf16.mxu0 %v4344_v24  ;;  %v4399_v24 = vld [vmem:[%s5505_s1 + $0x638] sm:$0xff]  }
  0xaa   :  { %3990 = vmatpush3.bf16.msra.mxu1 %v4343_v23  ;;  %v778_v23 = vcombine.high %v5241_v19, %v5241_v19 }
  0xab   :  { %3991 = vmatprep.subr.bf16.mxu1 %v4345_v25  ;;  %v809_v25 = vcombine.high %v799_v22, %v799_v22 }
  0xac   :  { %3970 = vmatpush3.bf16.msra.mxu0 %v4346_v26  ;;  %v785_v26 = vrot.slane %v769_v14, %v4637_v41  ;;  %v4434_v14 = vld [vmem:[%s5505_s1 + $0x840] sm:$0xff]  }
  0xad   :  { %3971 = vmatprep.subr.bf16.mxu0 %v4348_v28  ;;  %v4400_v28 = vld [vmem:[%s5505_s1 + $0x6b8] sm:$0xff]  }
  0xae   :  { %3992 = vmatpush3.bf16.msra.mxu1 %v4347_v27  ;;  %v4401_v27 = vld [vmem:[%s5505_s1 + $0x740] sm:$0xff]  }
  0xaf   :  { %3993 = vmatprep.subr.bf16.mxu1 %v4349_v29  ;;  %v806_v29 = vrot.slane %v778_v23, %v4637_v41  ;;  %v4442_v23 = vld [vmem:[%s5505_s1 + $0x850] sm:$0xff]  }
  0xb0   :  { %3972 = vmatpush3.bf16.msra.mxu0 %v4350_v30  ;;  %v4402_v30 = vld [vmem:[%s5505_s1 + $0x7c0] sm:$0xff]  }
  0xb1   :  { %3973 = vmatprep.subr.bf16.mxu0 %v4352_v32  ;;  %v807_v32 = vcombine.high %v785_v26, %v785_v26 }
  0xb2   :  { %3994 = vmatpush3.bf16.msra.mxu1 %v4351_v31  ;;  %v4403_v31 = vld [vmem:[%s5505_s1 + $0x700] sm:$0xff]  }
  0xb3   :  { %3995 = vmatprep.subr.bf16.mxu1 %v4353_v33  ;;  %v4405_v33 = vld [vmem:[%s5505_s1 + $0x748] sm:$0xff]  }
  0xb4   :  { %3974 = vmatpush3.bf16.msra.mxu0 %v4354_v34  ;;  %v4404_v34 = vld [vmem:[%s5505_s1 + $0x780] sm:$0xff]  }
  0xb5   :  { %3975 = vmatprep.subr.bf16.mxu0 %v4356_v36  ;;  %v4406_v36 = vld [vmem:[%s5505_s1 + $0x7c8] sm:$0xff]  }
  0xb6   :  { %3996 = vmatpush3.bf16.msra.mxu1 %v4355_v35  ;;  %v810_v35 = vcombine.high %v806_v29, %v806_v29 }
  0xb7   :  { %3997 = vmatprep.subr.bf16.mxu1 %v4357_v37  ;;  %v4407_v37 = vld [vmem:[%s5505_s1 + $0x708] sm:$0xff]  }
  0xb8   :  { %3976 = vmatpush3.bf16.msra.mxu0 %v4358_v38  ;;  %v4409_v38 = vld [vmem:[%s5505_s1 + $0x750] sm:$0xff]  }
  0xb9   :  { %3977 = vmatprep.subr.bf16.mxu0 %v4360_v40  ;;  %v4410_v40 = vld [vmem:[%s5505_s1 + $0x7d0] sm:$0xff]  }
  0xba   :  { %3998 = vmatpush3.bf16.msra.mxu1 %v4359_v39  ;;  %v4408_v39 = vld [vmem:[%s5505_s1 + $0x788] sm:$0xff]  }
  0xbb   :  { %3999 = vmatprep.subr.bf16.mxu1 %v4361_v42  ;;  %v4411_v42 = vld [vmem:[%s5505_s1 + $0x710] sm:$0xff]  }
  0xbc   :  { %3978 = vmatpush3.bf16.msra.mxu0 %v4362_v43  ;;  %v4413_v43 = vld [vmem:[%s5505_s1 + $0x758] sm:$0xff]  }
  0xbd   :  { %3979 = vmatprep.subr.bf16.mxu0 %v4364_v45  ;;  %v4414_v45 = vld [vmem:[%s5505_s1 + $0x7d8] sm:$0xff]  }
  0xbe   :  { %4000 = vmatpush3.bf16.msra.mxu1 %v4363_v44  ;;  %v4412_v44 = vld [vmem:[%s5505_s1 + $0x790] sm:$0xff]  }
  0xbf   :  { %4001 = vmatprep.subr.bf16.mxu1 %v4365_v46  ;;  %v4415_v46 = vld [vmem:[%s5505_s1 + $0x718] sm:$0xff]  }
  0xc0   :  { %3980 = vmatpush3.bf16.msra.mxu0 %v4366_v47  ;;  %v4416_v47 = vld [vmem:[%s5505_s1 + $0x798] sm:$0xff]  }
  0xc1   :  { %4009 = vmatprep.subr.bf16.mxu0 %v4369_v50  ;;  %v4419_v50 = vld [vmem:[%s5505_s1 + $0x720] sm:$0xff]  }
  0xc2   :  { %4002 = vmatpush3.bf16.msra.mxu1 %v4367_v48  ;;  %v4417_v48 = vld [vmem:[%s5505_s1 + $0x760] sm:$0xff]  }
  0xc3   :  { %3032 = vmatmul.mubr.bf16.vlgmr.msra.gmra.mrb[20].mxu0 %v743_v49  ;;  %4031 = vmatprep.subr.bf16.mxu1 %v4370_v51  ;;  %v4418_v49 = vld [vmem:[%s5505_s1 + $0x7e0] sm:$0xff]  }
  0xc4   :  { %4010 = vmatpush3.bf16.msra.mxu0 %v4371_v52  ;;  %3111 = vmatprep.mubr.bf16.mxu0 %v799_v22  ;;  %v4420_v51 = vld [vmem:[%s5505_s1 + $0x7a0] sm:$0xff]   ;;  %v4421_v52 = vld [vmem:[%s5505_s1 + $0x768] sm:$0xff]  }
  0xc5   :  { %3072 = vmatmul.mubr.bf16.vlgmr.msra.gmra.mrb[20].mxu1 %v759_v54  ;;  %4011 = vmatprep.subr.bf16.mxu0 %v4373_v55  ;;  %v4423_v54 = vld [vmem:[%s5505_s1 + $0x728] sm:$0xff]  }
  0xc6   :  { %4032 = vmatpush3.bf16.msra.mxu1 %v4372_v53  ;;  %3151 = vmatprep.mubr.bf16.mxu1 %v809_v25  ;;  %v4422_v53 = vld [vmem:[%s5505_s1 + $0x7e8] sm:$0xff]   ;;  %v4444_v25 = vld [vmem:[%s5505_s1 + $0x810] sm:$0xff]  }
  0xc7   :  { %4033 = vmatprep.subr.bf16.mxu1 %v4374_v56  ;;  %v4424_v55 = vld [vmem:[%s5505_s1 + $0x7a8] sm:$0xff]   ;;  %v3446_v56 = vld [vmem:[%s5506_s2] ss:$0 sm:$0xff] }
  0xc8   :  { %4012 = vmatpush3.bf16.msra.mxu0 %v4375_v57  ;;  %v4425_v57 = vld [vmem:[%s5505_s1 + $0x770] sm:$0xff]   ;;  %v4441_v22 = vld [vmem:[%s5505_s1 + $0x888] sm:$0xff]  }
  0xc9   :  { %4013 = vmatprep.subr.bf16.mxu0 %v4377_v59  ;;  %v4426_v59 = vld [vmem:[%s5505_s1 + $0x7f0] sm:$0xff]  }
  0xca   :  { %4034 = vmatpush3.bf16.msra.mxu1 %v4376_v58 }
  0xcb   :  { %4035 = vmatprep.subr.bf16.mxu1 %v4378_v60 }
  0xcc   :  { %4014 = vmatpush3.bf16.msra.mxu0 %v4379_v61  ;;  %v4427_v61 = vld [vmem:[%s5505_s1 + $0x730] sm:$0xff]  }
  0xcd   :  { %4015 = vmatprep.subr.bf16.mxu0 %v4381_v63 }
  0xce   :  { %4036 = vmatpush3.bf16.msra.mxu1 %v4380_v62 }
  0xcf   :  { %4037 = vmatprep.subr.bf16.mxu1 %v4382_v0 }
  0xd0   :  { %4016 = vmatpush3.bf16.msra.mxu0 %v4383_v1  ;;  %v4428_v1 = vld [vmem:[%s5505_s1 + $0x7b0] sm:$0xff]  }
  0xd1   :  { %4017 = vmatprep.subr.bf16.mxu0 %v4385_v3 }
  0xd2   :  { %4038 = vmatpush3.bf16.msra.mxu1 %v4384_v2  ;;  %v4429_v2 = vld [vmem:[%s5505_s1 + $0x778] sm:$0xff]  }
  0xd3   :  { %4039 = vmatprep.subr.bf16.mxu1 %v4386_v4 }
  0xd4   :  { %4018 = vmatpush3.bf16.msra.mxu0 %v4387_v5 }
  0xd5   :  { %4019 = vmatprep.subr.bf16.mxu0 %v4389_v7 }
  0xd6   :  { %4040 = vmatpush3.bf16.msra.mxu1 %v4388_v6 }
  0xd7   :  { %4041 = vmatprep.subr.bf16.mxu1 %v4390_v8  ;;  %v4430_v8 = vld [vmem:[%s5505_s1 + $0x7f8] sm:$0xff]  }
  0xd8   :  { %4020 = vmatpush3.bf16.msra.mxu0 %v4391_v9 }
  0xd9   :  { %4021 = vmatprep.subr.bf16.mxu0 %v4393_v11 }
  0xda   :  { %4042 = vmatpush3.bf16.msra.mxu1 %v4392_v10  ;;  %v4431_v10 = vld [vmem:[%s5505_s1 + $0x738] sm:$0xff]  }
  0xdb   :  { %4043 = vmatprep.subr.bf16.mxu1 %v4394_v13  ;;  %v792_v13 = vrot.slane %v5241_v19, %v4637_v41  ;;  %v4438_v19 = vld [vmem:[%s5505_s1 + $0x848] sm:$0xff]  }
  0xdc   :  { %4022 = vmatpush3.bf16.msra.mxu0 %v4395_v16  ;;  %v4436_v16 = vld [vmem:[%s5505_s1 + $0x800] sm:$0xff]  }
  0xdd   :  { %4023 = vmatprep.subr.bf16.mxu0 %v4397_v17  ;;  %v4437_v17 = vld [vmem:[%s5505_s1 + $0x880] sm:$0xff]   ;;  %v808_v18 = vcombine.high %v792_v13, %v792_v13 }
  0xde   :  { %4044 = vmatpush3.bf16.msra.mxu1 %v4396_v20  ;;  %v4439_v20 = vld [vmem:[%s5505_s1 + $0x8c8] sm:$0xff]  }
  0xdf   :  { %4045 = vmatprep.subr.bf16.mxu1 %v4398_v21  ;;  %v4440_v21 = vld [vmem:[%s5505_s1 + $0x808] sm:$0xff]  }
  0xe0   :  { %4024 = vmatpush3.bf16.msra.mxu0 %v4399_v24  ;;  %v4443_v24 = vld [vmem:[%s5505_s1 + $0x8d0] sm:$0xff]  }
  0xe1   :  { %4053 = vmatprep.subr.bf16.mxu0 %v4401_v27  ;;  %v4446_v27 = vld [vmem:[%s5505_s1 + $0x858] sm:$0xff]  }
  0xe2   :  { %4046 = vmatpush3.bf16.msra.mxu1 %v4400_v28  ;;  %v4447_v28 = vld [vmem:[%s5505_s1 + $0x8d8] sm:$0xff]  }
  0xe3   :  { %3112 = vmatmul.mubr.bf16.vlgmr.msra.gmra.mrb[24].mxu0 %v785_v26  ;;  %4075 = vmatprep.subr.bf16.mxu1 %v4402_v30  ;;  %v4445_v26 = vld [vmem:[%s5505_s1 + $0x890] sm:$0xff]   ;;  %v4449_v30 = vld [vmem:[%s5505_s1 + $0x898] sm:$0xff]  }
  0xe4   :  { %4054 = vmatpush3.bf16.msra.mxu0 %v4403_v31  ;;  %3191 = vmatprep.mubr.bf16.mxu0 %v806_v29  ;;  %v4448_v29 = vld [vmem:[%s5505_s1 + $0x818] sm:$0xff]   ;;  %v4450_v31 = vld [vmem:[%s5505_s1 + $0x860] sm:$0xff]  }
  0xe5   :  { %3152 = vmatmul.mubr.bf16.vlgmr.msra.gmra.mrb[24].mxu1 %v807_v32  ;;  %4055 = vmatprep.subr.bf16.mxu0 %v4405_v33  ;;  %v4451_v32 = vld [vmem:[%s5505_s1 + $0x8e0] sm:$0xff]  }
  0xe6   :  { %4076 = vmatpush3.bf16.msra.mxu1 %v4404_v34  ;;  %3231 = vmatprep.mubr.bf16.mxu1 %v810_v35  ;;  %v4452_v33 = vld [vmem:[%s5505_s1 + $0x820] sm:$0xff]   ;;  %v4454_v35 = vld [vmem:[%s5505_s1 + $0x868] sm:$0xff]  }
  0xe7   :  { %4077 = vmatprep.subr.bf16.mxu1 %v4406_v36  ;;  %v4453_v34 = vld [vmem:[%s5505_s1 + $0x8a0] sm:$0xff]   ;;  %v4455_v36 = vld [vmem:[%s5505_s1 + $0x8e8] sm:$0xff]  }
  0xe8   :  { %4056 = vmatpush3.bf16.msra.mxu0 %v4407_v37  ;;  %v4456_v37 = vld [vmem:[%s5505_s1 + $0x828] sm:$0xff]  }
  0xe9   :  { %4057 = vmatprep.subr.bf16.mxu0 %v4409_v38  ;;  %v4457_v38 = vld [vmem:[%s5505_s1 + $0x8a8] sm:$0xff]  }
  0xea   :  { %4078 = vmatpush3.bf16.msra.mxu1 %v4408_v39  ;;  %v4458_v39 = vld [vmem:[%s5505_s1 + $0x870] sm:$0xff]  }
  0xeb   :  { %4079 = vmatprep.subr.bf16.mxu1 %v4410_v40  ;;  %v4459_v40 = vld [vmem:[%s5505_s1 + $0x8f0] sm:$0xff]  }
  0xec   :  { %4058 = vmatpush3.bf16.msra.mxu0 %v4411_v42 }
  0xed   :  { %4059 = vmatprep.subr.bf16.mxu0 %v4413_v43  ;;  %v4460_v43 = vld [vmem:[%s5505_s1 + $0x830] sm:$0xff]  }
  0xee   :  { %4080 = vmatpush3.bf16.msra.mxu1 %v4412_v44 }
  0xef   :  { %4081 = vmatprep.subr.bf16.mxu1 %v4414_v45  ;;  %v4462_v45 = vld [vmem:[%s5505_s1 + $0x878] sm:$0xff]  }
  0xf0   :  { %4060 = vmatpush3.bf16.msra.mxu0 %v4415_v46  ;;  %v3447_v46 = vld.sshfl [vmem:[%s5504_s0 + $0x20] sm:$0x33 pattern:$0x75316420] }
  0xf1   :  { %4061 = vmatprep.subr.bf16.mxu0 %v4417_v48 }
  0xf2   :  { %4082 = vmatpush3.bf16.msra.mxu1 %v4416_v47 }
  0xf3   :  { %4083 = vmatprep.subr.bf16.mxu1 %v4418_v49 }
  0xf4   :  { %4062 = vmatpush3.bf16.msra.mxu0 %v4419_v50  ;;  %v4461_v50 = vld [vmem:[%s5505_s1 + $0x8b0] sm:$0xff]  }
  0xf5   :  { %4063 = vmatprep.subr.bf16.mxu0 %v4421_v52 }
  0xf6   :  { %4084 = vmatpush3.bf16.msra.mxu1 %v4420_v51  ;;  %v3761_v58 = vpop.f32.mrb[0].mxu0  ;;  %v818_v51 = vcombine.high %v3447_v46, %v3447_v46 }
  0xf7   :  { %v3762_v60 = vpop.f32.mrb[1].mxu0  ;;  %4085 = vmatprep.subr.bf16.mxu1 %v4422_v53  ;;  %v3783_v62 = vpop.f32.mrb[0].mxu1 }
  0xf8   :  { %v3763_v63 = vadd.f32 %v3762_v60, %v3761_v58  ;;  %v3764_v0 = vpop.f32.mrb[2].mxu0  ;;  %4064 = vmatpush3.bf16.msra.mxu0 %v4423_v54  ;;  %v3784_v3 = vpop.f32.mrb[1].mxu1  ;;  %v832_v58 = vrot.slane %v818_v51, %v4637_v41  ;;  %v4464_v60 = vld [vmem:[%s5505_s1 + $0x838] sm:$0xff]  }
  0xf9   :  { %v3765_v4 = vpop.f32.mrb[3].mxu0  ;;  %4065 = vmatprep.subr.bf16.mxu0 %v4425_v57  ;;  %v3785_v6 = vadd.f32 %v3784_v3, %v3783_v62  ;;  %v3786_v7 = vpop.f32.mrb[2].mxu1  ;;  %v4463_v57 = vld [vmem:[%s5505_s1 + $0x8f8] sm:$0xff]   ;;  %v825_v0 = vrot.slane %v3447_v46, %v4637_v41 }
  0xfa   :  { %v2634_v5 = vadd.f32 %v3763_v63, %v3446_v56  ;;  %4086 = vmatpush3.bf16.msra.mxu1 %v4424_v55  ;;  %v3787_v9 = vpop.f32.mrb[3].mxu1  ;;  %v4465_v62 = vld [vmem:[%s5505_s1 + $0x8b8] sm:$0xff]   ;;  %v834_v63 = vcombine.high %v832_v58, %v832_v58 }
  0xfb   :  { %4087 = vmatprep.subr.bf16.mxu1 %v4426_v59 }
  0xfc   :  { %v5356_v11 = vadd.f32 %v3785_v6, %v2634_v5  ;;  %4066 = vmatpush3.bf16.msra.mxu0 %v4427_v61 }
  0xfd   :  { %4067 = vmatprep.subr.bf16.mxu0 %v4429_v2 }
  0xfe   :  { %4088 = vmatpush3.bf16.msra.mxu1 %v4428_v1 }
  0xff   :  { %4089 = vmatprep.subr.bf16.mxu1 %v4430_v8 }
 0x100   :  { %4068 = vmatpush3.bf16.msra.mxu0 %v4431_v10 }
 0x101   :  { %4097 = vmatprep.subr.bf16.mxu0 %v4434_v14 }
 0x102   :  { %4090 = vmatpush3.bf16.msra.mxu1 %v4432_v12 }
 0x103   :  { %3192 = vmatmul.mubr.bf16.vlgmr.msra.gmra.mrb[28].mxu0 %v792_v13  ;;  %4119 = vmatprep.subr.bf16.mxu1 %v4435_v15 }
 0x104   :  { %4098 = vmatpush3.bf16.msra.mxu0 %v4436_v16  ;;  %3271 = vmatprep.mubr.bf16.mxu0 %v832_v58 }
 0x105   :  { %3232 = vmatmul.mubr.bf16.vlgmr.msra.gmra.mrb[28].mxu1 %v808_v18  ;;  %4099 = vmatprep.subr.bf16.mxu0 %v4438_v19 }
 0x106   :  { %4120 = vmatpush3.bf16.msra.mxu1 %v4437_v17  ;;  %3311 = vmatprep.mubr.bf16.mxu1 %v834_v63 }
 0x107   :  { %4121 = vmatprep.subr.bf16.mxu1 %v4439_v20 }
 0x108   :  { %4100 = vmatpush3.bf16.msra.mxu0 %v4440_v21 }
 0x109   :  { %4101 = vmatprep.subr.bf16.mxu0 %v4442_v23 }
 0x10a   :  { %4122 = vmatpush3.bf16.msra.mxu1 %v4441_v22 }
 0x10b   :  { %4123 = vmatprep.subr.bf16.mxu1 %v4443_v24 }
 0x10c   :  { %4102 = vmatpush3.bf16.msra.mxu0 %v4444_v25 }
 0x10d   :  { %4103 = vmatprep.subr.bf16.mxu0 %v4446_v27 }
 0x10e   :  { %4124 = vmatpush3.bf16.msra.mxu1 %v4445_v26 }
 0x10f   :  { %4125 = vmatprep.subr.bf16.mxu1 %v4447_v28 }
 0x110   :  { %4104 = vmatpush3.bf16.msra.mxu0 %v4448_v29 }
 0x111   :  { %4105 = vmatprep.subr.bf16.mxu0 %v4450_v31 }
 0x112   :  { %4126 = vmatpush3.bf16.msra.mxu1 %v4449_v30 }
 0x113   :  { %4127 = vmatprep.subr.bf16.mxu1 %v4451_v32 }
 0x114   :  { %4106 = vmatpush3.bf16.msra.mxu0 %v4452_v33 }
 0x115   :  { %4107 = vmatprep.subr.bf16.mxu0 %v4454_v35 }
 0x116   :  { %4128 = vmatpush3.bf16.msra.mxu1 %v4453_v34  ;;  %v3805_v42 = vpop.f32.mrb[4].mxu0 }
 0x117   :  { %v3806_v44 = vpop.f32.mrb[5].mxu0  ;;  %4129 = vmatprep.subr.bf16.mxu1 %v4455_v36  ;;  %v3827_v47 = vpop.f32.mrb[4].mxu1 }
 0x118   :  { %v3807_v48 = vadd.f32 %v3806_v44, %v3805_v42  ;;  %v3808_v49 = vpop.f32.mrb[6].mxu0  ;;  %4108 = vmatpush3.bf16.msra.mxu0 %v4456_v37  ;;  %v3828_v52 = vpop.f32.mrb[5].mxu1 }
 0x119   :  { %v3809_v53 = vpop.f32.mrb[7].mxu0  ;;  %4109 = vmatprep.subr.bf16.mxu0 %v4458_v39  ;;  %v3829_v55 = vadd.f32 %v3828_v52, %v3827_v47  ;;  %v3830_v56 = vpop.f32.mrb[6].mxu1 }
 0x11a   :  { %v2714_v54 = vadd.f32 %v3807_v48, %v5356_v11  ;;  %4130 = vmatpush3.bf16.msra.mxu1 %v4457_v38  ;;  %v3831_v59 = vpop.f32.mrb[7].mxu1 }
 0x11b   :  { %4131 = vmatprep.subr.bf16.mxu1 %v4459_v40 }
 0x11c   :  { %v2754_v61 = vadd.f32 %v3829_v55, %v2714_v54  ;;  %4110 = vmatpush3.bf16.msra.mxu0 %v4460_v43 }
 0x11d   :  { %4111 = vmatprep.subr.bf16.mxu0 %v4462_v45 }
 0x11e   :  { %4132 = vmatpush3.bf16.msra.mxu1 %v4461_v50 }
 0x11f   :  { %10 = vsyncpa [#allocation3], 0  ;;  %4133 = vmatprep.subr.bf16.mxu1 %v4463_v57  ;;  %v833_v1 = vcombine.high %v825_v0, %v825_v0  ;;  %v4466_v25 = vld [vmem:[%s5507_s3] sm:$0xff]   ;;  %v4499_v26 = vmov 0.0   ;;  %v4467_v27 = vld [vmem:[%s5507_s3 + $0x8] sm:$0xff]   ;;  %vm4500_vm0 = vmmov 0  }
 0x120   :  { %4112 = vmatpush3.bf16.msra.mxu0 %v4464_v60  ;;  %v4468_v28 = vld [vmem:[%s5507_s3 + $0x10] sm:$0xff]   ;;  %v4469_v29 = vld [vmem:[%s5507_s3 + $0x18] sm:$0xff]   ;;  %v4470_v30 = vld [vmem:[%s5507_s3 + $0x20] sm:$0xff]   ;;  %s4501_s17 = smov [#allocation2]  }
 0x121   :  { %4150 = vmatprep.subr.bf16.mxu0 %v4499_v26  ;;  %v4471_v31 = vld [vmem:[%s5507_s3 + $0x28] sm:$0xff]   ;;  %v4472_v39 = vld [vmem:[%s5507_s3 + $0x30] sm:$0xff]   ;;  %v4473_v46 = vld [vmem:[%s5507_s3 + $0x38] sm:$0xff]   ;;  %s3438_s18 = sshll.u32 %s4501_s17, 4  ;;  %s3439_s18 = int_to_ptr.vmem [resolvable:$true] %s3438_s18 }
 0x122   :  { %4134 = vmatpush3.bf16.msra.mxu1 %v4465_v62  ;;  %s4474_s19 = scalar_lea.vmem %s3439_s18, 32  ;;  %p4479_p1 = scmp.lt.s32.totalorder %s3439_s18, %s3439_s18 }
 0x123   :  { %3272 = vmatmul.mubr.bf16.vlgmr.msra.gmra.mrb[32].mxu0 %v825_v0  ;;  %p4475_p0 = scmp.ne.s32.totalorder %s3439_s18, %s4474_s19  ;;  %p4480_p2 = scmp.lt.s32.totalorder %s4474_s19, %s4474_s19 }
 0x124   :  { %4151 = vmatpush3.bf16.msra.mxu0 %v4466_v25  ;;  %4166 = vmatprep.mubr.msk.bf16.mxu0 %vm4500_vm0, %v4499_v26 }
 0x125   :  { %3312 = vmatmul.mubr.bf16.vlgmr.msra.gmra.mrb[32].mxu1 %v833_v1  ;;  %4152 = vmatprep.subr.bf16.mxu0 %v4499_v26  ;;  %p4481_p3 = por %p4480_p2, %p4479_p1 }
 0x127   :  { %p4482_p4 = pnand %p4481_p3, %p4475_p0 }
 0x128   :  { %4153 = vmatpush3.bf16.msra.mxu0 %v4467_v27 }
 0x129   :  { %4154 = vmatprep.subr.bf16.mxu0 %v4499_v26 }
 0x12c   :  { %4155 = vmatpush3.bf16.msra.mxu0 %v4468_v28 }
 0x12d   :  { %4156 = vmatprep.subr.bf16.mxu0 %v4499_v26 }
 0x130   :  { %4157 = vmatpush3.bf16.msra.mxu0 %v4469_v29 }
 0x131   :  { %4158 = vmatprep.subr.bf16.mxu0 %v4499_v26 }
 0x134   :  { %4159 = vmatpush3.bf16.msra.mxu0 %v4470_v30 }
 0x135   :  { %4160 = vmatprep.subr.bf16.mxu0 %v4499_v26 }
 0x136   :  { %v3849_v2 = vpop.f32.mrb[8].mxu0 }
 0x137   :  { %v3850_v3 = vpop.f32.mrb[9].mxu0 }
 0x138   :  { %v3871_v4 = vpop.f32.mrb[8].mxu1  ;;  %v3851_v5 = vadd.f32 %v3850_v3, %v3849_v2  ;;  %v3852_v6 = vpop.f32.mrb[10].mxu0  ;;  %4161 = vmatpush3.bf16.msra.mxu0 %v4471_v31  ;;  %v3736_v31 = vld [vmem:[%s5508_s4] ss:$0 sm:$0xff] }
 0x139   :  { %v3872_v7 = vpop.f32.mrb[9].mxu1  ;;  %v3853_v8 = vpop.f32.mrb[11].mxu0  ;;  %4162 = vmatprep.subr.bf16.mxu0 %v4499_v26 }
 0x13a   :  { %v2794_v9 = vadd.f32 %v3851_v5, %v2754_v61  ;;  %v3873_v10 = vadd.f32 %v3872_v7, %v3871_v4  ;;  %v3874_v11 = vpop.f32.mrb[10].mxu1 }
 0x13b   :  { %v3875_v41 = vpop.f32.mrb[11].mxu1 }
 0x13c   :  { %v2834_v12 = vadd.f32 %v3873_v10, %v2794_v9  ;;  %4163 = vmatpush3.bf16.msra.mxu0 %v4472_v39 }
 0x13d   :  { %4164 = vmatprep.subr.bf16.mxu0 %v4499_v26 }
 0x140   :  { %4165 = vmatpush3.bf16.msra.mxu0 %v4473_v46 }
 0x156   :  { %v3893_v13 = vpop.f32.mrb[12].mxu0 }
 0x157   :  { %v3894_v14 = vpop.f32.mrb[13].mxu0 }
 0x158   :  { %v3915_v15 = vpop.f32.mrb[12].mxu1  ;;  %v3895_v16 = vadd.f32 %v3894_v14, %v3893_v13  ;;  %v3896_v17 = vpop.f32.mrb[14].mxu0 }
 0x159   :  { %v3916_v18 = vpop.f32.mrb[13].mxu1  ;;  %v3897_v19 = vpop.f32.mrb[15].mxu0 }
 0x15a   :  { %v2874_v20 = vadd.f32 %v3895_v16, %v2834_v12  ;;  %v3917_v21 = vadd.f32 %v3916_v18, %v3915_v15  ;;  %v3918_v22 = vpop.f32.mrb[14].mxu1 }
 0x15b   :  { %v3919_v23 = vpop.f32.mrb[15].mxu1 }
 0x15c   :  { %v2914_v24 = vadd.f32 %v3917_v21, %v2874_v20 }
 0x176   :  { %v3937_v32 = vpop.f32.mrb[16].mxu0 }
 0x177   :  { %v3938_v33 = vpop.f32.mrb[17].mxu0 }
 0x178   :  { %v3959_v34 = vpop.f32.mrb[16].mxu1  ;;  %v3939_v35 = vadd.f32 %v3938_v33, %v3937_v32  ;;  %v3940_v36 = vpop.f32.mrb[18].mxu0 }
 0x179   :  { %v3960_v37 = vpop.f32.mrb[17].mxu1  ;;  %v3941_v38 = vpop.f32.mrb[19].mxu0 }
 0x17a   :  { %v2954_v40 = vadd.f32 %v3939_v35, %v2914_v24  ;;  %v3961_v42 = vadd.f32 %v3960_v37, %v3959_v34  ;;  %v3962_v43 = vpop.f32.mrb[18].mxu1 }
 0x17b   :  { %v3963_v44 = vpop.f32.mrb[19].mxu1 }
 0x17c   :  { %v2994_v45 = vadd.f32 %v3961_v42, %v2954_v40 }
 0x196   :  { %v3981_v47 = vpop.f32.mrb[20].mxu0 }
 0x197   :  { %v3982_v48 = vpop.f32.mrb[21].mxu0 }
 0x198   :  { %v4003_v49 = vpop.f32.mrb[20].mxu1  ;;  %v3983_v50 = vadd.f32 %v3982_v48, %v3981_v47  ;;  %v3984_v51 = vpop.f32.mrb[22].mxu0 }
 0x199   :  { %v4004_v52 = vpop.f32.mrb[21].mxu1  ;;  %v3985_v53 = vpop.f32.mrb[23].mxu0 }
 0x19a   :  { %v3034_v54 = vadd.f32 %v3983_v50, %v2994_v45  ;;  %v4005_v55 = vadd.f32 %v4004_v52, %v4003_v49  ;;  %v4006_v56 = vpop.f32.mrb[22].mxu1 }
 0x19b   :  { %v4007_v57 = vpop.f32.mrb[23].mxu1 }
 0x19c   :  { %v3074_v58 = vadd.f32 %v4005_v55, %v3034_v54 }
 0x1b6   :  { %v4025_v59 = vpop.f32.mrb[24].mxu0 }
 0x1b7   :  { %v4026_v60 = vpop.f32.mrb[25].mxu0 }
 0x1b8   :  { %v4047_v61 = vpop.f32.mrb[24].mxu1  ;;  %v4027_v62 = vadd.f32 %v4026_v60, %v4025_v59  ;;  %v4028_v63 = vpop.f32.mrb[26].mxu0 }
 0x1b9   :  { %v4048_v0 = vpop.f32.mrb[25].mxu1  ;;  %v4029_v1 = vpop.f32.mrb[27].mxu0 }
 0x1ba   :  { %v3114_v2 = vadd.f32 %v4027_v62, %v3074_v58  ;;  %v4049_v3 = vadd.f32 %v4048_v0, %v4047_v61  ;;  %v4050_v4 = vpop.f32.mrb[26].mxu1 }
 0x1bb   :  { %v4051_v5 = vpop.f32.mrb[27].mxu1 }
 0x1bc   :  { %v3154_v6 = vadd.f32 %v4049_v3, %v3114_v2 }
 0x1d6   :  { %v4069_v7 = vpop.f32.mrb[28].mxu0 }
 0x1d7   :  { %v4070_v8 = vpop.f32.mrb[29].mxu0 }
 0x1d8   :  { %v4091_v9 = vpop.f32.mrb[28].mxu1  ;;  %v4071_v10 = vadd.f32 %v4070_v8, %v4069_v7  ;;  %v4072_v11 = vpop.f32.mrb[30].mxu0 }
 0x1d9   :  { %v4092_v41 = vpop.f32.mrb[29].mxu1  ;;  %v4073_v12 = vpop.f32.mrb[31].mxu0 }
 0x1da   :  { %v3194_v13 = vadd.f32 %v4071_v10, %v3154_v6  ;;  %v4093_v14 = vadd.f32 %v4092_v41, %v4091_v9  ;;  %v4094_v15 = vpop.f32.mrb[30].mxu1 }
 0x1db   :  { %v4095_v16 = vpop.f32.mrb[31].mxu1 }
 0x1dc   :  { %v3234_v17 = vadd.f32 %v4093_v14, %v3194_v13 }
 0x1f6   :  { %v4113_v18 = vpop.f32.mrb[32].mxu0 }
 0x1f7   :  { %v4114_v19 = vpop.f32.mrb[33].mxu0 }
 0x1f8   :  { %v4135_v20 = vpop.f32.mrb[32].mxu1  ;;  %v4115_v21 = vadd.f32 %v4114_v19, %v4113_v18  ;;  %v4116_v22 = vpop.f32.mrb[34].mxu0 }
 0x1f9   :  { %v4136_v23 = vpop.f32.mrb[33].mxu1  ;;  %v4117_v24 = vpop.f32.mrb[35].mxu0 }
 0x1fa   :  { %v3274_v25 = vadd.f32 %v4115_v21, %v3234_v17  ;;  %v4137_v26 = vadd.f32 %v4136_v23, %v4135_v20  ;;  %v4138_v27 = vpop.f32.mrb[34].mxu1 }
 0x1fb   :  { %v4139_v28 = vpop.f32.mrb[35].mxu1 }
 0x1fc   :  { %v3314_v29 = vadd.f32 %v4137_v26, %v3274_v25 }
 0x1fe   :  { %v3319_v30 = vpack.c.bf16 %v3314_v29, %v3314_v29 }
 0x200   :  { %4167 = vmatmul.mubr.bf16.vlgmr.msra.gmra.mrb[36].mxu0 %v3319_v30 }
 0x2d3   :  { %v3425_v32 = vpop.f32.mrb[36].mxu0 }
 0x2d4   :  { %v3426_v33 = vadd.f32 %v3736_v31, %v3425_v32  ;;  %v4168_v34 = vpop.f32.mrb[37].mxu0 }
 0x2d5   :  { %v3428_v35 = vpop.f32.mrb[38].mxu0 }
 0x2d6   :  { %3431 = vst [vmem:[#allocation2] sm:$0x3] %v3426_v33  ;;  %v4169_v36 = vpop.f32.mrb[39].mxu0 }
 0x2d7   :  { %4485 = shalt.err (!%p4482_p4)
}
 0x2d8   :  { %s4486_s4 = scalar_lea.hbm %s5509_s5, 32 }
 0x2d9   :  { %p4487_p5 = scmp.ne.s32.totalorder %s5509_s5, %s4486_s4  ;;  %p4490_p6 = scmp.lt.u32.totalorder %s4486_s4, %s5509_s5 }
 0x2db   :  { %p4492_p7 = pnand %p4490_p6, %p4487_p5 }
 0x2dd   :  { %4495 = shalt.err (!%p4492_p7)
}
 0x2de   :  { %3441 = dma.vmem_to_hbm [thread:$0]  %s3439_s18, 32, %s5509_s5, [#allocation3]  }
 0x2df   :  { %4496 = dma.done.wait [#allocation3], 32  }
 0x2e0   :  { %4497 = vsyncadd [#allocation3], 4294967264 }
 0x2e1   :  { %3445 = vsyncpa [#allocation3], 1 }

</bundles_post_ra>
